<compile_context>
chip_gen: v5e
topology: v5e:2x2
jax: 0.10.0
libtpu: 0.0.40
codegen_flags: <defaults>
</compile_context>

<pallas_src>
import jax
import jax.numpy as jnp
from jax import lax
from jax.experimental import pallas as pl
from jax.experimental.pallas import tpu as pltpu


# ---------------------------------------------------------------------------
# Host-side (trace-time) folding of weights into lane-dense slab-space matrices
# ---------------------------------------------------------------------------

def bilinear_matrix(n_in, n_out):
    """1-D bilinear interpolation matrix (n_out, n_in), align_corners=True."""
    i = jnp.arange(n_out, dtype=jnp.float32)
    src = i * (n_in - 1) / (n_out - 1)
    i0 = jnp.clip(jnp.floor(src).astype(jnp.int32), 0, n_in - 2)
    frac = src - i0.astype(jnp.float32)
    rows = jnp.arange(n_out)
    m = jnp.zeros((n_out, n_in), jnp.float32)
    m = m.at[rows, i0].add(1.0 - frac)
    m = m.at[rows, i0 + 1].add(frac)
    return m


def conv3x3_band_matrices(w_hwio, W):
    """Fold a 3x3 'same' conv (PyTorch cross-correlation) into 3 slab matrices.

    Returns M with shape (3, W*Ci, W*Co) such that, with Xs the (H, W*Ci) slab
    of the input image and Xp its zero-ROW-padded (H+2, W*Ci) version,
        Y_slab = sum_ky  Xp[ky:ky+H, :] @ M[ky]
    equals the conv output slab (H, W*Co).  The kx taps and the W-boundary
    zero padding are baked into the band structure of M.
    """
    kH, kW, Ci, Co = w_hwio.shape
    kx = jnp.arange(kW)[:, None, None]
    s = jnp.arange(W)[None, :, None]
    w_ = jnp.arange(W)[None, None, :]
    sel = (s == w_ + kx - 1).astype(w_hwio.dtype)            # (3, W, W)
    m = jnp.einsum('ksw,ykio->ysiwo', sel, w_hwio)           # (3, W, Ci, W, Co)
    return m.reshape(kH, W * Ci, W * Co)


# ---------------------------------------------------------------------------
# Kernel A: conv0 + BN partial statistics accumulated over the batch in-kernel
# ---------------------------------------------------------------------------

def conv0_stats_kernel(x_ref, m0_ref, b0_ref, y_ref, sum_ref, ssq_ref, xp_ref):
    """
    x_ref  : (1, H, W*Ci)    lane-dense input slab (one batch element)
    m0_ref : (3, W*Ci, W*Ci) slab-space band matrices of the conv0 weights
    b0_ref : (1, W*Ci)       conv0 bias tiled over W
    y_ref  : (1, H, W*Ci)    conv0 output slab (lane-dense store, per image)
    sum_ref: (1, 1, W*Ci)    per-lane column sums of y, accumulated over batch
    ssq_ref: (1, 1, W*Ci)    per-lane column sums of y^2, accumulated over batch
    xp_ref : (H+2, W*Ci)     VMEM scratch: zero-row-padded input slab
    """
    n = pl.program_id(0)
    H = x_ref.shape[1]
    WC = x_ref.shape[2]

    @pl.when(n == 0)
    def _():
        sum_ref[...] = jnp.zeros_like(sum_ref)
        ssq_ref[...] = jnp.zeros_like(ssq_ref)

    # H-halo handled in VMEM (no HBM-side jnp.pad); W-halo is in the band matrices.
    xp_ref[0:1, :] = jnp.zeros((1, WC), jnp.float32)
    xp_ref[H + 1:H + 2, :] = jnp.zeros((1, WC), jnp.float32)
    xp_ref[1:H + 1, :] = x_ref[0]

    acc = jnp.dot(xp_ref[0:H, :], m0_ref[0], preferred_element_type=jnp.float32)
    acc = acc + jnp.dot(xp_ref[1:H + 1, :], m0_ref[1], preferred_element_type=jnp.float32)
    acc = acc + jnp.dot(xp_ref[2:H + 2, :], m0_ref[2], preferred_element_type=jnp.float32)
    acc = acc + b0_ref[...]

    y_ref[0] = acc.astype(y_ref.dtype)
    sum_ref[0] += jnp.sum(acc, axis=0, keepdims=True)
    ssq_ref[0] += jnp.sum(acc * acc, axis=0, keepdims=True)


def conv0_with_stats(x_slab, m0, b0_t):
    N, H, WC = x_slab.shape
    return pl.pallas_call(
        conv0_stats_kernel,
        out_shape=(
            jax.ShapeDtypeStruct((N, H, WC), jnp.float32),
            jax.ShapeDtypeStruct((1, 1, WC), jnp.float32),
            jax.ShapeDtypeStruct((1, 1, WC), jnp.float32),
        ),
        grid=(N,),
        in_specs=[
            pl.BlockSpec((1, H, WC), lambda n: (n, 0, 0)),
            pl.BlockSpec((3, WC, WC), lambda n: (0, 0, 0)),
            pl.BlockSpec((1, WC), lambda n: (0, 0)),
        ],
        out_specs=(
            pl.BlockSpec((1, H, WC), lambda n: (n, 0, 0)),
            # stats blocks are revisited across n -> VMEM-resident accumulators
            pl.BlockSpec((1, 1, WC), lambda n: (0, 0, 0)),
            pl.BlockSpec((1, 1, WC), lambda n: (0, 0, 0)),
        ),
        scratch_shapes=[pltpu.VMEM((H + 2, WC), jnp.float32)],
        compiler_params=pltpu.CompilerParams(dimension_semantics=("arbitrary",)),
    )(x_slab, m0, b0_t)


# ---------------------------------------------------------------------------
# Kernel B: BN + ReLU + bilinear x2 (align_corners=True) + conv1, fully fused
# ---------------------------------------------------------------------------

def bn_up_conv1_kernel(y_ref, sc_ref, sh_ref, wy_ref, a_ref, b1_ref, o_ref, tp_ref):
    """
    y_ref : (1, H, W*C)        conv0 output slab
    sc_ref: (1, W*C)           BN scale (gamma / sqrt(var+eps)) tiled over W
    sh_ref: (1, W*C)           BN shift (beta - mean*scale)     tiled over W
    wy_ref: (Ho, H)            row-interpolation matrix (bilinear x2, align_corners)
    a_ref : (3, W*C, Wo*Cout)  column-interp (kron wx^T x I_C) @ conv1 band matrices
    b1_ref: (1, Wo*Cout)       conv1 bias tiled over Wo
    o_ref : (1, Ho, Wo*Cout)   final output slab (lane-dense store)
    tp_ref: (Ho+2, W*C)        VMEM scratch: row-upsampled activations, zero-row padded
    """
    Ho = o_ref.shape[1]
    WC = y_ref.shape[2]

    # BatchNorm (folded to per-channel scale/shift) + ReLU, lane-dense on the VPU.
    z = jnp.maximum(y_ref[0] * sc_ref[...] + sh_ref[...], 0.0)           # (H, W*C)

    # Zero-row padding for conv1's H halo (in VMEM, never in HBM); row-upsample
    # lands directly in the padded scratch.
    tp_ref[0:1, :] = jnp.zeros((1, WC), jnp.float32)
    tp_ref[Ho + 1:Ho + 2, :] = jnp.zeros((1, WC), jnp.float32)
    tp_ref[1:Ho + 1, :] = jnp.dot(wy_ref[...], z,
                                  preferred_element_type=jnp.float32)    # (Ho, W*C)

    # Column upsample + conv1 in 3 band matmuls; the (Ho, Wo, C) upsampled
    # tensor is never materialized (a_ref = (kron(wx^T, I_C)) @ conv1_band[ky]).
    acc = jnp.dot(tp_ref[0:Ho, :], a_ref[0], preferred_element_type=jnp.float32)
    acc = acc + jnp.dot(tp_ref[1:Ho + 1, :], a_ref[1], preferred_element_type=jnp.float32)
    acc = acc + jnp.dot(tp_ref[2:Ho + 2, :], a_ref[2], preferred_element_type=jnp.float32)
    acc = acc + b1_ref[...]

    o_ref[0] = acc.astype(o_ref.dtype)


def bn_up_conv1(y_slab, scale_t, shift_t, wy, a_mats, b1_t):
    N, H, WC = y_slab.shape
    Ho = wy.shape[0]
    WoCout = a_mats.shape[-1]
    return pl.pallas_call(
        bn_up_conv1_kernel,
        out_shape=jax.ShapeDtypeStruct((N, Ho, WoCout), jnp.float32),
        grid=(N,),
        in_specs=[
            pl.BlockSpec((1, H, WC), lambda n: (n, 0, 0)),
            pl.BlockSpec((1, WC), lambda n: (0, 0)),
            pl.BlockSpec((1, WC), lambda n: (0, 0)),
            pl.BlockSpec((Ho, H), lambda n: (0, 0)),
            pl.BlockSpec((3, WC, WoCout), lambda n: (0, 0, 0)),
            pl.BlockSpec((1, WoCout), lambda n: (0, 0)),
        ],
        out_specs=pl.BlockSpec((1, Ho, WoCout), lambda n: (n, 0, 0)),
        scratch_shapes=[pltpu.VMEM((Ho + 2, WC), jnp.float32)],
        compiler_params=pltpu.CompilerParams(dimension_semantics=("parallel",)),
    )(y_slab, scale_t, shift_t, wy, a_mats, b1_t)


# ---------------------------------------------------------------------------
# Forward pass (equivalent of Upsampler.forward, NHWC in / NHWC out)
# ---------------------------------------------------------------------------

def upsampler_forward(x, w0, b0, gamma, beta, w1, b1, eps=1e-5):
    """x: (N, H, W, n_feat) NHWC; w*: (3,3,Cin,Cout) HWIO. Returns (N, 2H, 2W, out_feat)."""
    N, H, W, C = x.shape
    Cout = w1.shape[-1]
    Ho, Wo = 2 * H, 2 * W

    # ---- trace-time weight folding into lane-dense slab-space matrices ----
    m0 = conv3x3_band_matrices(w0, W)                              # (3, W*C, W*C)
    b0_t = jnp.tile(b0, W).reshape(1, W * C)

    wy = bilinear_matrix(H, Ho)                                    # (Ho, H)
    wx = bilinear_matrix(W, Wo)                                    # (Wo, W)
    ax = jnp.kron(wx.T, jnp.eye(C, dtype=jnp.float32))             # (W*C, Wo*C)
    m1 = conv3x3_band_matrices(w1, Wo)                             # (3, Wo*C, Wo*Cout)
    a_mats = jnp.einsum('ab,ybc->yac', ax, m1)                     # (3, W*C, Wo*Cout)
    b1_t = jnp.tile(b1, Wo).reshape(1, Wo * Cout)

    # ---- kernel A: conv0 + batch-accumulated BN partials (lane-dense slabs) ----
    x_slab = x.reshape(N, H, W * C)                                # free HBM reshape
    y_slab, sums, ssqs = conv0_with_stats(x_slab, m0, b0_t)

    # ---- BN batch statistics (training-mode BatchNorm2d), folded to scale/shift
    # Only the tiny per-channel fold-down (W*C -> C vectors) remains in XLA glue.
    cnt = N * H * W
    ch_sum = sums.reshape(W, C).sum(axis=0)
    ch_ssq = ssqs.reshape(W, C).sum(axis=0)
    mean = ch_sum / cnt
    var = jnp.maximum(ch_ssq / cnt - mean * mean, 0.0)             # biased var (PyTorch BN)
    scale = gamma / jnp.sqrt(var + eps)
    shift = beta - mean * scale
    scale_t = jnp.tile(scale, W).reshape(1, W * C)
    shift_t = jnp.tile(shift, W).reshape(1, W * C)

    # ---- kernel B: BN + ReLU + bilinear x2 + conv1, fully fused ----
    out_slab = bn_up_conv1(y_slab, scale_t, shift_t, wy, a_mats, b1_t)
    return out_slab.reshape(N, Ho, Wo, Cout)


# ---------------------------------------------------------------------------
# Pure-JAX reference (independent conv/BN path) for a structural sanity check
# ---------------------------------------------------------------------------

def upsampler_reference(x, w0, b0, gamma, beta, w1, b1, eps=1e-5):
    dn = ('NHWC', 'HWIO', 'NHWC')
    y = lax.conv_general_dilated(x, w0, (1, 1), ((1, 1), (1, 1)),
                                 dimension_numbers=dn,
                                 precision=lax.Precision.HIGHEST) + b0
    mean = y.mean(axis=(0, 1, 2))
    var = ((y - mean) ** 2).mean(axis=(0, 1, 2))
    z = jnp.maximum((y - mean) / jnp.sqrt(var + eps) * gamma + beta, 0.0)
    _, H, W, _ = z.shape
    wy = bilinear_matrix(H, 2 * H)
    wx = bilinear_matrix(W, 2 * W)
    u = jnp.einsum('oh,nhwc->nowc', wy, z, precision=lax.Precision.HIGHEST)
    u = jnp.einsum('pw,nowc->nopc', wx, u, precision=lax.Precision.HIGHEST)
    return lax.conv_general_dilated(u, w1, (1, 1), ((1, 1), (1, 1)),
                                    dimension_numbers=dn,
                                    precision=lax.Precision.HIGHEST) + b1


# ---------------------------------------------------------------------------
# Demo
# ---------------------------------------------------------------------------

if __name__ == "__main__":
    key = jax.random.PRNGKey(0)
    N, H, W = 2, 16, 16
    n_feat, out_feat = 8, 16

    k_x, k_w0, k_b0, k_w1, k_b1 = jax.random.split(key, 5)
    x = jax.random.normal(k_x, (N, H, W, n_feat), jnp.float32)                  # NHWC
    w0 = 0.1 * jax.random.normal(k_w0, (3, 3, n_feat, n_feat), jnp.float32)     # HWIO
    b0 = 0.1 * jax.random.normal(k_b0, (n_feat,), jnp.float32)
    w1 = 0.1 * jax.random.normal(k_w1, (3, 3, n_feat, out_feat), jnp.float32)   # HWIO
    b1 = 0.1 * jax.random.normal(k_b1, (out_feat,), jnp.float32)
    gamma = 1.0 + 0.01 * jnp.arange(n_feat, dtype=jnp.float32)
    beta = 0.01 * jnp.arange(n_feat, dtype=jnp.float32)

    fwd = jax.jit(upsampler_forward)
    out = jax.block_until_ready(fwd(x, w0, b0, gamma, beta, w1, b1))
    assert out.shape == (N, 2 * H, 2 * W, out_feat), out.shape
    assert bool(jnp.all(jnp.isfinite(out)))

    ref = jax.block_until_ready(upsampler_reference(x, w0, b0, gamma, beta, w1, b1))
    assert bool(jnp.allclose(out, ref, atol=5e-2, rtol=0.0)), \
        float(jnp.max(jnp.abs(out - ref)))

    # TODO(synk): PyTorch BatchNorm2d also mutates running_mean/running_var
    # module buffers in training mode; that stateful side-effect is not part of
    # the functional forward and is not replicated here.
    print("KERNEL_OK")
</pallas_src>

<mosaic_0001>
module attributes {stable_mosaic.version = 11 : i64} {
  func.func @conv0_stats_kernel(%arg0: i32, %arg1: memref<1x16x128xf32, #tpu.memory_space<vmem>>, %arg2: memref<3x128x128xf32, #tpu.memory_space<vmem>>, %arg3: memref<1x128xf32, #tpu.memory_space<vmem>>, %arg4: memref<1x16x128xf32, #tpu.memory_space<vmem>>, %arg5: memref<1x1x128xf32, #tpu.memory_space<vmem>>, %arg6: memref<1x1x128xf32, #tpu.memory_space<vmem>>, %arg7: memref<18x128xf32, #tpu.memory_space<vmem>>) attributes {dimension_semantics = [#tpu.dimension_semantics<arbitrary>], iteration_bounds = array<i64: 2>, scalar_prefetch = 0 : i64, scratch_operands = 1 : i64, tpu.core_type = #tpu.core_type<tc>, window_params = [{transform_indices = @transform_0, window_bounds = array<i64: 1, 16, 128>}, {pipeline_mode = #tpu.pipeline_mode<synchronous>, transform_indices = @transform_1, window_bounds = array<i64: 3, 128, 128>}, {pipeline_mode = #tpu.pipeline_mode<synchronous>, transform_indices = @transform_2, window_bounds = array<i64: 1, 128>}, {transform_indices = @transform_3, window_bounds = array<i64: 1, 16, 128>}, {pipeline_mode = #tpu.pipeline_mode<synchronous>, transform_indices = @transform_4, window_bounds = array<i64: 1, 1, 128>}, {pipeline_mode = #tpu.pipeline_mode<synchronous>, transform_indices = @transform_5, window_bounds = array<i64: 1, 1, 128>}]} {
    %c0_i32 = arith.constant 0 : i32
    %0 = arith.cmpi eq, %arg0, %c0_i32 : i32
    %1 = arith.extui %0 : i1 to i32
    %c0_i32_0 = arith.constant 0 : i32
    %2 = arith.cmpi ne, %1, %c0_i32_0 : i32
    scf.if %2 {
      %cst_44 = arith.constant 0.000000e+00 : f32
      %47 = vector.broadcast %cst_44 : f32 to vector<1x1x128xf32>
      %c0_45 = arith.constant 0 : index
      %c0_46 = arith.constant 0 : index
      %c0_47 = arith.constant 0 : index
      %48 = vector.load %arg5[%c0_45, %c0_46, %c0_47] : memref<1x1x128xf32, #tpu.memory_space<vmem>>, vector<1x1x128xf32>
      tpu.vector_store %arg5[%c0_45, %c0_46, %c0_47], %47 {strides = array<i32>} : memref<1x1x128xf32, #tpu.memory_space<vmem>>, vector<1x1x128xf32>,
      %cst_48 = arith.constant 0.000000e+00 : f32
      %49 = vector.broadcast %cst_48 : f32 to vector<1x1x128xf32>
      %c0_49 = arith.constant 0 : index
      %c0_50 = arith.constant 0 : index
      %c0_51 = arith.constant 0 : index
      %50 = vector.load %arg6[%c0_49, %c0_50, %c0_51] : memref<1x1x128xf32, #tpu.memory_space<vmem>>, vector<1x1x128xf32>
      tpu.vector_store %arg6[%c0_49, %c0_50, %c0_51], %49 {strides = array<i32>} : memref<1x1x128xf32, #tpu.memory_space<vmem>>, vector<1x1x128xf32>,
    } else {
    }
    %cst = arith.constant 0.000000e+00 : f32
    %3 = vector.broadcast %cst : f32 to vector<1x128xf32>
    %c0 = arith.constant 0 : index
    %c0_1 = arith.constant 0 : index
    %4 = vector.load %arg7[%c0, %c0_1] : memref<18x128xf32, #tpu.memory_space<vmem>>, vector<1x128xf32>
    tpu.vector_store %arg7[%c0, %c0_1], %3 {strides = array<i32>} : memref<18x128xf32, #tpu.memory_space<vmem>>, vector<1x128xf32>,
    %cst_2 = arith.constant 0.000000e+00 : f32
    %5 = vector.broadcast %cst_2 : f32 to vector<1x128xf32>
    %c17 = arith.constant 17 : index
    %c0_3 = arith.constant 0 : index
    %6 = vector.load %arg7[%c17, %c0_3] : memref<18x128xf32, #tpu.memory_space<vmem>>, vector<1x128xf32>
    tpu.vector_store %arg7[%c17, %c0_3], %5 {strides = array<i32>} : memref<18x128xf32, #tpu.memory_space<vmem>>, vector<1x128xf32>,
    %c0_4 = arith.constant 0 : index
    %c0_5 = arith.constant 0 : index
    %c0_6 = arith.constant 0 : index
    %7 = vector.load %arg1[%c0_4, %c0_5, %c0_6] : memref<1x16x128xf32, #tpu.memory_space<vmem>>, vector<1x16x128xf32>
    %8 = vector.shape_cast %7 : vector<1x16x128xf32> to vector<16x128xf32>
    %c1 = arith.constant 1 : index
    %c0_7 = arith.constant 0 : index
    %9 = vector.load %arg7[%c1, %c0_7] : memref<18x128xf32, #tpu.memory_space<vmem>>, vector<16x128xf32>
    tpu.vector_store %arg7[%c1, %c0_7], %8 {strides = array<i32>} : memref<18x128xf32, #tpu.memory_space<vmem>>, vector<16x128xf32>,
    %c0_8 = arith.constant 0 : index
    %c0_9 = arith.constant 0 : index
    %10 = vector.load %arg7[%c0_8, %c0_9] : memref<18x128xf32, #tpu.memory_space<vmem>>, vector<16x128xf32>
    %c0_10 = arith.constant 0 : index
    %c0_11 = arith.constant 0 : index
    %c0_12 = arith.constant 0 : index
    %11 = vector.load %arg2[%c0_10, %c0_11, %c0_12] : memref<3x128x128xf32, #tpu.memory_space<vmem>>, vector<1x128x128xf32>
    %12 = vector.shape_cast %11 : vector<1x128x128xf32> to vector<128x128xf32>
    %cst_13 = arith.constant dense<0.000000e+00> : vector<16x128xf32>
    %13 = tpu.matmul %10, %12, %cst_13 {dimension_numbers = #tpu.dot_dimension_numbers<[1], [0], [0], [1], [0, 0, 1, 1], [], []>} : vector<16x128xf32>, vector<128x128xf32>, vector<16x128xf32> -> vector<16x128xf32>
    %c1_14 = arith.constant 1 : index
    %c0_15 = arith.constant 0 : index
    %14 = vector.load %arg7[%c1_14, %c0_15] : memref<18x128xf32, #tpu.memory_space<vmem>>, vector<16x128xf32>
    %c1_16 = arith.constant 1 : index
    %c0_17 = arith.constant 0 : index
    %c0_18 = arith.constant 0 : index
    %15 = vector.load %arg2[%c1_16, %c0_17, %c0_18] : memref<3x128x128xf32, #tpu.memory_space<vmem>>, vector<1x128x128xf32>
    %16 = vector.shape_cast %15 : vector<1x128x128xf32> to vector<128x128xf32>
    %cst_19 = arith.constant dense<0.000000e+00> : vector<16x128xf32>
    %17 = tpu.matmul %14, %16, %cst_19 {dimension_numbers = #tpu.dot_dimension_numbers<[1], [0], [0], [1], [0, 0, 1, 1], [], []>} : vector<16x128xf32>, vector<128x128xf32>, vector<16x128xf32> -> vector<16x128xf32>
    %18 = arith.addf %13, %17 : vector<16x128xf32>
    %c2 = arith.constant 2 : index
    %c0_20 = arith.constant 0 : index
    %19 = vector.load %arg7[%c2, %c0_20] : memref<18x128xf32, #tpu.memory_space<vmem>>, vector<16x128xf32>
    %c2_21 = arith.constant 2 : index
    %c0_22 = arith.constant 0 : index
    %c0_23 = arith.constant 0 : index
    %20 = vector.load %arg2[%c2_21, %c0_22, %c0_23] : memref<3x128x128xf32, #tpu.memory_space<vmem>>, vector<1x128x128xf32>
    %21 = vector.shape_cast %20 : vector<1x128x128xf32> to vector<128x128xf32>
    %cst_24 = arith.constant dense<0.000000e+00> : vector<16x128xf32>
    %22 = tpu.matmul %19, %21, %cst_24 {dimension_numbers = #tpu.dot_dimension_numbers<[1], [0], [0], [1], [0, 0, 1, 1], [], []>} : vector<16x128xf32>, vector<128x128xf32>, vector<16x128xf32> -> vector<16x128xf32>
    %23 = arith.addf %18, %22 : vector<16x128xf32>
    %c0_25 = arith.constant 0 : index
    %c0_26 = arith.constant 0 : index
    %24 = vector.load %arg3[%c0_25, %c0_26] : memref<1x128xf32, #tpu.memory_space<vmem>>, vector<1x128xf32>
    %25 = vector.broadcast %24 : vector<1x128xf32> to vector<16x128xf32>
    %26 = arith.addf %23, %25 : vector<16x128xf32>
    %c0_27 = arith.constant 0 : index
    %c0_28 = arith.constant 0 : index
    %c0_29 = arith.constant 0 : index
    %27 = vector.load %arg4[%c0_27, %c0_28, %c0_29] : memref<1x16x128xf32, #tpu.memory_space<vmem>>, vector<1x16x128xf32>
    %28 = vector.shape_cast %27 : vector<1x16x128xf32> to vector<16x128xf32>
    %29 = vector.shape_cast %26 : vector<16x128xf32> to vector<1x16x128xf32>
    tpu.vector_store %arg4[%c0_27, %c0_28, %c0_29], %29 {strides = array<i32>} : memref<1x16x128xf32, #tpu.memory_space<vmem>>, vector<1x16x128xf32>,
    %c0_30 = arith.constant 0 : index
    %c0_31 = arith.constant 0 : index
    %c0_32 = arith.constant 0 : index
    %30 = vector.load %arg5[%c0_30, %c0_31, %c0_32] : memref<1x1x128xf32, #tpu.memory_space<vmem>>, vector<1x1x128xf32>
    %31 = vector.shape_cast %30 : vector<1x1x128xf32> to vector<1x128xf32>
    %cst_33 = arith.constant dense<0.000000e+00> : vector<128xf32>
    %32 = vector.multi_reduction <add>, %26, %cst_33 [0] : vector<16x128xf32> to vector<128xf32>
    %33 = vector.shape_cast %32 : vector<128xf32> to vector<1x128xf32>
    %34 = arith.addf %31, %33 : vector<1x128xf32>
    %c0_34 = arith.constant 0 : index
    %c0_35 = arith.constant 0 : index
    %c0_36 = arith.constant 0 : index
    %35 = vector.load %arg5[%c0_34, %c0_35, %c0_36] : memref<1x1x128xf32, #tpu.memory_space<vmem>>, vector<1x1x128xf32>
    %36 = vector.shape_cast %35 : vector<1x1x128xf32> to vector<1x128xf32>
    %37 = vector.shape_cast %34 : vector<1x128xf32> to vector<1x1x128xf32>
    tpu.vector_store %arg5[%c0_34, %c0_35, %c0_36], %37 {strides = array<i32>} : memref<1x1x128xf32, #tpu.memory_space<vmem>>, vector<1x1x128xf32>,
    %c0_37 = arith.constant 0 : index
    %c0_38 = arith.constant 0 : index
    %c0_39 = arith.constant 0 : index
    %38 = vector.load %arg6[%c0_37, %c0_38, %c0_39] : memref<1x1x128xf32, #tpu.memory_space<vmem>>, vector<1x1x128xf32>
    %39 = vector.shape_cast %38 : vector<1x1x128xf32> to vector<1x128xf32>
    %40 = arith.mulf %26, %26 : vector<16x128xf32>
    %cst_40 = arith.constant dense<0.000000e+00> : vector<128xf32>
    %41 = vector.multi_reduction <add>, %40, %cst_40 [0] : vector<16x128xf32> to vector<128xf32>
    %42 = vector.shape_cast %41 : vector<128xf32> to vector<1x128xf32>
    %43 = arith.addf %39, %42 : vector<1x128xf32>
    %c0_41 = arith.constant 0 : index
    %c0_42 = arith.constant 0 : index
    %c0_43 = arith.constant 0 : index
    %44 = vector.load %arg6[%c0_41, %c0_42, %c0_43] : memref<1x1x128xf32, #tpu.memory_space<vmem>>, vector<1x1x128xf32>
    %45 = vector.shape_cast %44 : vector<1x1x128xf32> to vector<1x128xf32>
    %46 = vector.shape_cast %43 : vector<1x128xf32> to vector<1x1x128xf32>
    tpu.vector_store %arg6[%c0_41, %c0_42, %c0_43], %46 {strides = array<i32>} : memref<1x1x128xf32, #tpu.memory_space<vmem>>, vector<1x1x128xf32>,
    return
  }
  func.func @transform_0(%arg0: i32) -> (i32, i32, i32) {
    %c0_i32 = arith.constant 0 : i32
    %c0_i32_0 = arith.constant 0 : i32
    %c0_i32_1 = arith.constant 0 : i32
    return %arg0, %c0_i32, %c0_i32_0 : i32, i32, i32
  }
  func.func @transform_1(%arg0: i32) -> (i32, i32, i32) {
    %c0_i32 = arith.constant 0 : i32
    %c0_i32_0 = arith.constant 0 : i32
    %c0_i32_1 = arith.constant 0 : i32
    %c0_i32_2 = arith.constant 0 : i32
    return %c0_i32, %c0_i32_0, %c0_i32_1 : i32, i32, i32
  }
  func.func @transform_2(%arg0: i32) -> (i32, i32) {
    %c0_i32 = arith.constant 0 : i32
    %c0_i32_0 = arith.constant 0 : i32
    %c0_i32_1 = arith.constant 0 : i32
    return %c0_i32, %c0_i32_0 : i32, i32
  }
  func.func @transform_3(%arg0: i32) -> (i32, i32, i32) {
    %c0_i32 = arith.constant 0 : i32
    %c0_i32_0 = arith.constant 0 : i32
    %c0_i32_1 = arith.constant 0 : i32
    return %arg0, %c0_i32, %c0_i32_0 : i32, i32, i32
  }
  func.func @transform_4(%arg0: i32) -> (i32, i32, i32) {
    %c0_i32 = arith.constant 0 : i32
    %c0_i32_0 = arith.constant 0 : i32
    %c0_i32_1 = arith.constant 0 : i32
    %c0_i32_2 = arith.constant 0 : i32
    return %c0_i32, %c0_i32_0, %c0_i32_1 : i32, i32, i32
  }
  func.func @transform_5(%arg0: i32) -> (i32, i32, i32) {
    %c0_i32 = arith.constant 0 : i32
    %c0_i32_0 = arith.constant 0 : i32
    %c0_i32_1 = arith.constant 0 : i32
    %c0_i32_2 = arith.constant 0 : i32
    return %c0_i32, %c0_i32_0, %c0_i32_1 : i32, i32, i32
  }
}

module attributes {stable_mosaic.version = 11 : i64} {
  func.func @bn_up_conv1_kernel(%arg0: i32, %arg1: memref<1x16x128xf32, #tpu.memory_space<vmem>>, %arg2: memref<1x128xf32, #tpu.memory_space<vmem>>, %arg3: memref<1x128xf32, #tpu.memory_space<vmem>>, %arg4: memref<32x16xf32, #tpu.memory_space<vmem>>, %arg5: memref<3x128x512xf32, #tpu.memory_space<vmem>>, %arg6: memref<1x512xf32, #tpu.memory_space<vmem>>, %arg7: memref<1x32x512xf32, #tpu.memory_space<vmem>>, %arg8: memref<34x128xf32, #tpu.memory_space<vmem>>) attributes {dimension_semantics = [#tpu.dimension_semantics<parallel>], iteration_bounds = array<i64: 2>, scalar_prefetch = 0 : i64, scratch_operands = 1 : i64, tpu.core_type = #tpu.core_type<tc>, window_params = [{transform_indices = @transform_0, window_bounds = array<i64: 1, 16, 128>}, {pipeline_mode = #tpu.pipeline_mode<synchronous>, transform_indices = @transform_1, window_bounds = array<i64: 1, 128>}, {pipeline_mode = #tpu.pipeline_mode<synchronous>, transform_indices = @transform_2, window_bounds = array<i64: 1, 128>}, {pipeline_mode = #tpu.pipeline_mode<synchronous>, transform_indices = @transform_3, window_bounds = array<i64: 32, 16>}, {pipeline_mode = #tpu.pipeline_mode<synchronous>, transform_indices = @transform_4, window_bounds = array<i64: 3, 128, 512>}, {pipeline_mode = #tpu.pipeline_mode<synchronous>, transform_indices = @transform_5, window_bounds = array<i64: 1, 512>}, {transform_indices = @transform_6, window_bounds = array<i64: 1, 32, 512>}]} {
    %c0 = arith.constant 0 : index
    %c0_0 = arith.constant 0 : index
    %c0_1 = arith.constant 0 : index
    %0 = vector.load %arg1[%c0, %c0_0, %c0_1] : memref<1x16x128xf32, #tpu.memory_space<vmem>>, vector<1x16x128xf32>
    %1 = vector.shape_cast %0 : vector<1x16x128xf32> to vector<16x128xf32>
    %c0_2 = arith.constant 0 : index
    %c0_3 = arith.constant 0 : index
    %2 = vector.load %arg2[%c0_2, %c0_3] : memref<1x128xf32, #tpu.memory_space<vmem>>, vector<1x128xf32>
    %3 = vector.broadcast %2 : vector<1x128xf32> to vector<16x128xf32>
    %4 = arith.mulf %1, %3 : vector<16x128xf32>
    %c0_4 = arith.constant 0 : index
    %c0_5 = arith.constant 0 : index
    %5 = vector.load %arg3[%c0_4, %c0_5] : memref<1x128xf32, #tpu.memory_space<vmem>>, vector<1x128xf32>
    %6 = vector.broadcast %5 : vector<1x128xf32> to vector<16x128xf32>
    %7 = arith.addf %4, %6 : vector<16x128xf32>
    %cst = arith.constant 0.000000e+00 : f32
    %8 = vector.broadcast %cst : f32 to vector<16x128xf32>
    %9 = arith.maximumf %7, %8 : vector<16x128xf32>
    %cst_6 = arith.constant 0.000000e+00 : f32
    %10 = vector.broadcast %cst_6 : f32 to vector<1x128xf32>
    %c0_7 = arith.constant 0 : index
    %c0_8 = arith.constant 0 : index
    %11 = vector.load %arg8[%c0_7, %c0_8] : memref<34x128xf32, #tpu.memory_space<vmem>>, vector<1x128xf32>
    tpu.vector_store %arg8[%c0_7, %c0_8], %10 {strides = array<i32>} : memref<34x128xf32, #tpu.memory_space<vmem>>, vector<1x128xf32>,
    %cst_9 = arith.constant 0.000000e+00 : f32
    %12 = vector.broadcast %cst_9 : f32 to vector<1x128xf32>
    %c33 = arith.constant 33 : index
    %c0_10 = arith.constant 0 : index
    %13 = vector.load %arg8[%c33, %c0_10] : memref<34x128xf32, #tpu.memory_space<vmem>>, vector<1x128xf32>
    tpu.vector_store %arg8[%c33, %c0_10], %12 {strides = array<i32>} : memref<34x128xf32, #tpu.memory_space<vmem>>, vector<1x128xf32>,
    %c0_11 = arith.constant 0 : index
    %c0_12 = arith.constant 0 : index
    %14 = vector.load %arg4[%c0_11, %c0_12] : memref<32x16xf32, #tpu.memory_space<vmem>>, vector<32x16xf32>
    %cst_13 = arith.constant dense<0.000000e+00> : vector<32x128xf32>
    %15 = tpu.matmul %14, %9, %cst_13 {dimension_numbers = #tpu.dot_dimension_numbers<[1], [0], [0], [1], [0, 0, 1, 1], [], []>} : vector<32x16xf32>, vector<16x128xf32>, vector<32x128xf32> -> vector<32x128xf32>
    %c1 = arith.constant 1 : index
    %c0_14 = arith.constant 0 : index
    %16 = vector.load %arg8[%c1, %c0_14] : memref<34x128xf32, #tpu.memory_space<vmem>>, vector<32x128xf32>
    tpu.vector_store %arg8[%c1, %c0_14], %15 {strides = array<i32>} : memref<34x128xf32, #tpu.memory_space<vmem>>, vector<32x128xf32>,
    %c0_15 = arith.constant 0 : index
    %c0_16 = arith.constant 0 : index
    %17 = vector.load %arg8[%c0_15, %c0_16] : memref<34x128xf32, #tpu.memory_space<vmem>>, vector<32x128xf32>
    %c0_17 = arith.constant 0 : index
    %c0_18 = arith.constant 0 : index
    %c0_19 = arith.constant 0 : index
    %18 = vector.load %arg5[%c0_17, %c0_18, %c0_19] : memref<3x128x512xf32, #tpu.memory_space<vmem>>, vector<1x128x512xf32>
    %19 = vector.shape_cast %18 : vector<1x128x512xf32> to vector<128x512xf32>
    %cst_20 = arith.constant dense<0.000000e+00> : vector<32x512xf32>
    %20 = tpu.matmul %17, %19, %cst_20 {dimension_numbers = #tpu.dot_dimension_numbers<[1], [0], [0], [1], [0, 0, 1, 1], [], []>} : vector<32x128xf32>, vector<128x512xf32>, vector<32x512xf32> -> vector<32x512xf32>
    %c1_21 = arith.constant 1 : index
    %c0_22 = arith.constant 0 : index
    %21 = vector.load %arg8[%c1_21, %c0_22] : memref<34x128xf32, #tpu.memory_space<vmem>>, vector<32x128xf32>
    %c1_23 = arith.constant 1 : index
    %c0_24 = arith.constant 0 : index
    %c0_25 = arith.constant 0 : index
    %22 = vector.load %arg5[%c1_23, %c0_24, %c0_25] : memref<3x128x512xf32, #tpu.memory_space<vmem>>, vector<1x128x512xf32>
    %23 = vector.shape_cast %22 : vector<1x128x512xf32> to vector<128x512xf32>
    %cst_26 = arith.constant dense<0.000000e+00> : vector<32x512xf32>
    %24 = tpu.matmul %21, %23, %cst_26 {dimension_numbers = #tpu.dot_dimension_numbers<[1], [0], [0], [1], [0, 0, 1, 1], [], []>} : vector<32x128xf32>, vector<128x512xf32>, vector<32x512xf32> -> vector<32x512xf32>
    %25 = arith.addf %20, %24 : vector<32x512xf32>
    %c2 = arith.constant 2 : index
    %c0_27 = arith.constant 0 : index
    %26 = vector.load %arg8[%c2, %c0_27] : memref<34x128xf32, #tpu.memory_space<vmem>>, vector<32x128xf32>
    %c2_28 = arith.constant 2 : index
    %c0_29 = arith.constant 0 : index
    %c0_30 = arith.constant 0 : index
    %27 = vector.load %arg5[%c2_28, %c0_29, %c0_30] : memref<3x128x512xf32, #tpu.memory_space<vmem>>, vector<1x128x512xf32>
    %28 = vector.shape_cast %27 : vector<1x128x512xf32> to vector<128x512xf32>
    %cst_31 = arith.constant dense<0.000000e+00> : vector<32x512xf32>
    %29 = tpu.matmul %26, %28, %cst_31 {dimension_numbers = #tpu.dot_dimension_numbers<[1], [0], [0], [1], [0, 0, 1, 1], [], []>} : vector<32x128xf32>, vector<128x512xf32>, vector<32x512xf32> -> vector<32x512xf32>
    %30 = arith.addf %25, %29 : vector<32x512xf32>
    %c0_32 = arith.constant 0 : index
    %c0_33 = arith.constant 0 : index
    %31 = vector.load %arg6[%c0_32, %c0_33] : memref<1x512xf32, #tpu.memory_space<vmem>>, vector<1x512xf32>
    %32 = vector.broadcast %31 : vector<1x512xf32> to vector<32x512xf32>
    %33 = arith.addf %30, %32 : vector<32x512xf32>
    %c0_34 = arith.constant 0 : index
    %c0_35 = arith.constant 0 : index
    %c0_36 = arith.constant 0 : index
    %34 = vector.load %arg7[%c0_34, %c0_35, %c0_36] : memref<1x32x512xf32, #tpu.memory_space<vmem>>, vector<1x32x512xf32>
    %35 = vector.shape_cast %34 : vector<1x32x512xf32> to vector<32x512xf32>
    %36 = vector.shape_cast %33 : vector<32x512xf32> to vector<1x32x512xf32>
    tpu.vector_store %arg7[%c0_34, %c0_35, %c0_36], %36 {strides = array<i32>} : memref<1x32x512xf32, #tpu.memory_space<vmem>>, vector<1x32x512xf32>,
    return
  }
  func.func @transform_0(%arg0: i32) -> (i32, i32, i32) {
    %c0_i32 = arith.constant 0 : i32
    %c0_i32_0 = arith.constant 0 : i32
    %c0_i32_1 = arith.constant 0 : i32
    return %arg0, %c0_i32, %c0_i32_0 : i32, i32, i32
  }
  func.func @transform_1(%arg0: i32) -> (i32, i32) {
    %c0_i32 = arith.constant 0 : i32
    %c0_i32_0 = arith.constant 0 : i32
    %c0_i32_1 = arith.constant 0 : i32
    return %c0_i32, %c0_i32_0 : i32, i32
  }
  func.func @transform_2(%arg0: i32) -> (i32, i32) {
    %c0_i32 = arith.constant 0 : i32
    %c0_i32_0 = arith.constant 0 : i32
    %c0_i32_1 = arith.constant 0 : i32
    return %c0_i32, %c0_i32_0 : i32, i32
  }
  func.func @transform_3(%arg0: i32) -> (i32, i32) {
    %c0_i32 = arith.constant 0 : i32
    %c0_i32_0 = arith.constant 0 : i32
    %c0_i32_1 = arith.constant 0 : i32
    return %c0_i32, %c0_i32_0 : i32, i32
  }
  func.func @transform_4(%arg0: i32) -> (i32, i32, i32) {
    %c0_i32 = arith.constant 0 : i32
    %c0_i32_0 = arith.constant 0 : i32
    %c0_i32_1 = arith.constant 0 : i32
    %c0_i32_2 = arith.constant 0 : i32
    return %c0_i32, %c0_i32_0, %c0_i32_1 : i32, i32, i32
  }
  func.func @transform_5(%arg0: i32) -> (i32, i32) {
    %c0_i32 = arith.constant 0 : i32
    %c0_i32_0 = arith.constant 0 : i32
    %c0_i32_1 = arith.constant 0 : i32
    return %c0_i32, %c0_i32_0 : i32, i32
  }
  func.func @transform_6(%arg0: i32) -> (i32, i32, i32) {
    %c0_i32 = arith.constant 0 : i32
    %c0_i32_0 = arith.constant 0 : i32
    %c0_i32_1 = arith.constant 0 : i32
    return %arg0, %c0_i32, %c0_i32_0 : i32, i32, i32
  }
}

</mosaic_0001>

<bundles_post_ra>
// kernel: tile.23
= control target key start
LH: loop header
LB: loop body
LE: loop exit
PB: predicated region body
PF: predicated region fallthrough
CT: control target
= control target key end

     0   :  { %s28_s0 = inlined_call_operand.vmem [shape: f32[8], index: 0, kind: input, shape index: {}]   ;;  %s29_s1 = inlined_call_operand.vmem [shape: f32[16,8], index: 1, kind: output, shape index: {}]  }
   0x1   :  { %v4_v0 = vld [vmem:[%s28_s0] ss:$0 sm:$0xff] }
   0x2   :  { %5 = vst [vmem:[%s29_s1] sm:$0xff] %v4_v0 }
   0x3   :  { %8 = vst [vmem:[%s29_s1 + $0x8] sm:$0xff] %v4_v0 }

// kernel: tile.24
= control target key start
LH: loop header
LB: loop body
LE: loop exit
PB: predicated region body
PF: predicated region fallthrough
CT: control target
= control target key end

     0   :  { %s131_s10 = smov 120   ;;  %s132_s11 = smov 104   ;;  %vm3_vm0 = vcmask 64512   ;;  %vm9_vm1 = vcmask 1048512   ;;  %vm15_vm2 = vcmask 982912   ;;  %vm21_vm3 = vcmask 917312   ;;  %s207_s0 = inlined_call_operand.vmem [shape: f32[16,8], index: 0, kind: input, shape index: {}]   ;;  %s208_s1 = inlined_call_operand.vmem [shape: f32[1,128], index: 1, kind: output, shape index: {}]  }
   0x1   :  { %v101_v0 = vld [vmem:[%s207_s0 + $0xf] sm:$0x1]   ;;  %v103_v1 = vld [vmem:[%s207_s0 + $0xd] sm:$0x1]   ;;  %v105_v2 = vld [vmem:[%s207_s0 + $0xb] sm:$0x1]  }
   0x2   :  { %7 = vrot.lane.b32.xlu0 %v101_v0, %s131_s10  ;;  %19 = vrot.lane.b32.xlu1 %v103_v1, %s132_s11  ;;  %s133_s14 = smov 88   ;;  %v102_v3 = vld [vmem:[%s207_s0 + $0xe] sm:$0x1]   ;;  %v104_v4 = vld [vmem:[%s207_s0 + $0xc] sm:$0x1]   ;;  %s134_s19 = smov 112  }
   0x3   :  { %31 = vrot.lane.b32.xlu2 %v105_v2, %s133_s14  ;;  %s135_s20 = smov 96   ;;  %v106_v5 = vld [vmem:[%s207_s0 + $0xa] sm:$0x1]   ;;  %s136_s23 = smov 80   ;;  %v107_v6 = vld [vmem:[%s207_s0 + $0x9] sm:$0x1]  }
   0x4   :  { %v108_v7 = vld [vmem:[%s207_s0 + $0x8] sm:$0x1]   ;;  %s137_s28 = smov 72   ;;  %s138_s29 = smov 64   ;;  %v109_v8 = vld [vmem:[%s207_s0 + $0x7] sm:$0x1]  }
   0x5   :  { %s139_s3 = smov 56   ;;  %v110_v9 = vld [vmem:[%s207_s0 + $0x6] sm:$0x1]   ;;  %v111_v10 = vld [vmem:[%s207_s0 + $0x5] sm:$0x1]   ;;  %s140_s8 = smov 48  }
   0x6   :  { %s141_s9 = smov 40   ;;  %v112_v11 = vld [vmem:[%s207_s0 + $0x4] sm:$0x1]   ;;  %s142_s12 = smov 32   ;;  %v113_v12 = vld [vmem:[%s207_s0 + $0x3] sm:$0x1]  }
   0x7   :  { %v114_v13 = vld [vmem:[%s207_s0 + $0x2] sm:$0x1]   ;;  %s143_s17 = smov 24   ;;  %s144_s18 = smov 16   ;;  %v115_v14 = vld [vmem:[%s207_s0 + $0x1] sm:$0x1]  }
   0x8   :  { %s145_s21 = smov 8   ;;  %v2_v15 = vld [vmem:[%s207_s0] sm:$0x1]   ;;  %vm27_vm4 = vcmask 851712   ;;  %vm33_vm5 = vcmask 786112   ;;  %vm39_vm6 = vcmask 720512  }
   0x9   :  { %4 = vst.msk [vmem:[#allocation0] sm:$0x1] %vm3_vm0, %v2_v15   ;;  %vm45_vm7 = vcmask 654912   ;;  %vm51_vm8 = vcmask 589312   ;;  %vm57_vm9 = vcmask 523712   ;;  %vm63_vm10 = vcmask 458112  }
   0xa   :  { %13 = vrot.lane.b32.xlu0 %v102_v3, %s134_s19  ;;  %25 = vrot.lane.b32.xlu1 %v104_v4, %s135_s20  ;;  %vm69_vm11 = vcmask 392512   ;;  %vm75_vm12 = vcmask 326912   ;;  %vm81_vm13 = vcmask 261312   ;;  %vm87_vm14 = vcmask 195712  }
   0xb   :  { %37 = vrot.lane.b32.xlu2 %v106_v5, %s136_s23  ;;  %vm93_vm15 = vcmask 130112  }
  0x12   :  { %43 = vrot.lane.b32.xlu0 %v107_v6, %s137_s28  ;;  %49 = vrot.lane.b32.xlu1 %v108_v7, %s138_s29 }
  0x13   :  { %55 = vrot.lane.b32.xlu2 %v109_v8, %s139_s3 }
  0x1a   :  { %61 = vrot.lane.b32.xlu0 %v110_v9, %s140_s8  ;;  %67 = vrot.lane.b32.xlu1 %v111_v10, %s141_s9 }
  0x1b   :  { %73 = vrot.lane.b32.xlu2 %v112_v11, %s142_s12 }
  0x22   :  { %79 = vrot.lane.b32.xlu0 %v113_v12, %s143_s17  ;;  %85 = vrot.lane.b32.xlu1 %v114_v13, %s144_s18 }
  0x23   :  { %91 = vrot.lane.b32.xlu2 %v115_v14, %s145_s21 }
  0x5d   :  { %v32_v16 = vpop.permute.xlu2 %31  }
  0x65   :  { %v38_v17 = vpop.permute.xlu2 %37  }
  0x6d   :  { %v56_v18 = vpop.permute.xlu2 %55  }
  0x74   :  { %v8_v19 = vpop.permute.xlu0 %7   ;;  %v20_v20 = vpop.permute.xlu1 %19  }
  0x75   :  { %10 = vst.msk [vmem:[#allocation0] sm:$0x1] %vm9_vm1, %v8_v19   ;;  %v74_v21 = vpop.permute.xlu2 %73  }
  0x7c   :  { %v14_v22 = vpop.permute.xlu0 %13   ;;  %v26_v23 = vpop.permute.xlu1 %25  }
  0x7d   :  { %16 = vst.msk [vmem:[#allocation0] sm:$0x1] %vm15_vm2, %v14_v22   ;;  %v92_v24 = vpop.permute.xlu2 %91  }
  0x7e   :  { %22 = vst.msk [vmem:[#allocation0] sm:$0x1] %vm21_vm3, %v20_v20  }
  0x7f   :  { %28 = vst.msk [vmem:[#allocation0] sm:$0x1] %vm27_vm4, %v26_v23  }
  0x80   :  { %34 = vst.msk [vmem:[#allocation0] sm:$0x1] %vm33_vm5, %v32_v16  }
  0x81   :  { %40 = vst.msk [vmem:[#allocation0] sm:$0x1] %vm39_vm6, %v38_v17  }
  0x84   :  { %v44_v25 = vpop.permute.xlu0 %43   ;;  %v50_v26 = vpop.permute.xlu1 %49  }
  0x85   :  { %46 = vst.msk [vmem:[#allocation0] sm:$0x1] %vm45_vm7, %v44_v25  }
  0x86   :  { %52 = vst.msk [vmem:[#allocation0] sm:$0x1] %vm51_vm8, %v50_v26  }
  0x87   :  { %58 = vst.msk [vmem:[#allocation0] sm:$0x1] %vm57_vm9, %v56_v18  }
  0x8c   :  { %v62_v27 = vpop.permute.xlu0 %61   ;;  %v68_v28 = vpop.permute.xlu1 %67  }
  0x8d   :  { %64 = vst.msk [vmem:[#allocation0] sm:$0x1] %vm63_vm10, %v62_v27  }
  0x8e   :  { %70 = vst.msk [vmem:[#allocation0] sm:$0x1] %vm69_vm11, %v68_v28  }
  0x8f   :  { %76 = vst.msk [vmem:[#allocation0] sm:$0x1] %vm75_vm12, %v74_v21  }
  0x94   :  { %v80_v29 = vpop.permute.xlu0 %79   ;;  %v86_v30 = vpop.permute.xlu1 %85  }
  0x95   :  { %82 = vst.msk [vmem:[#allocation0] sm:$0x1] %vm81_vm13, %v80_v29  }
  0x96   :  { %88 = vst.msk [vmem:[#allocation0] sm:$0x1] %vm87_vm14, %v86_v30  }
  0x97   :  { %94 = vst.msk [vmem:[#allocation0] sm:$0x1] %vm93_vm15, %v92_v24  }
  0x9e   :  { %v97_v31 = vld [vmem:[#allocation0] sm:$0x1] }
  0x9f   :  { %100 = vst [vmem:[%s208_s1] sm:$0x1] %v97_v31 }

// kernel: upsampler_forward.2
= control target key start
LH: loop header
LB: loop body
LE: loop exit
PB: predicated region body
PF: predicated region fallthrough
CT: control target
= control target key end

     0   :  { %s569_s18 = smov 0   ;;  %s763_s0 = inlined_call_operand.vmem [shape: f32[2,16,128], index: 0, kind: input, shape index: {}]   ;;  %s764_s1 = inlined_call_operand.vmem [shape: f32[3,128,128], index: 1, kind: input, shape index: {}]   ;;  %s765_s2 = inlined_call_operand.vmem [shape: f32[1,128], index: 2, kind: input, shape index: {}]   ;;  %s766_s3 = inlined_call_operand.vmem [shape: f32[2,16,128], index: 3, kind: output, shape index: {0}]   ;;  %s767_s4 = inlined_call_operand.vmem [shape: f32[1,1,128], index: 4, kind: output, shape index: {1}]   ;;  %s768_s5 = inlined_call_operand.vmem [shape: f32[1,1,128], index: 5, kind: output, shape index: {2}]  }
   0x1 LB: > { %s456_s19 = sadd.s32 4294967295, %s535_s18   ;;  %p460_p0 = scmp.ge.s32.totalorder %s535_s18, 1  ;;  %s535_s18 = sphi %s569_s18, %s16_s18  }
   0x2   : > { %p182_p1 = scmp.lt.s32.totalorder %s535_s18, 3 }
   0x4   : > { %p183_p2 = pnand %p460_p0, %p182_p1 }
   0x5   : > { %p210_p3 = scmp.lt.s32.totalorder (!%p183_p2), %s456_s19, 1  ;;  %p465_p4 = scmp.ne.s32.totalorder (!%p183_p2), %s456_s19, 0 }
   0x6   : > { %186 = sbr.rel (%p183_p2) target bundleno = 215 (0xd7), region = 32 }
   0xb   : > { %s211_s20 = scalar_select %p210_p3, %s456_s19, 1 }
   0xc   : > { %223 = sbr.rel (%p465_p4) target bundleno = 20 (0x14), region = 36 }
   0xd   : > { %s500_s21 = sshll.u32 %s211_s20, 4 }
   0xe   : > { %s580_s24 = scalar_lea.vmem %s763_s0, %s500_s21  ;;  %s585_s27 = scalar_lea.vmem %s766_s3, %s500_s21 }
  0x11   : > { %v537_v0 = vmov 0.0  }
  0x12   : > { %224 = vst [vmem:[%s767_s4] sm:$0x1] %v537_v0 }
  0x13   : > { %225 = vst [vmem:[%s768_s5] sm:$0x1] %v537_v0 }
  0x14 PF: > { %v497_v1 = vld [vmem:[%s764_s1 + $0x178] sm:$0xff]  ;;  %v496_v2 = vld [vmem:[%s764_s1 + $0x170] sm:$0xff]  ;;  %v538_v6 = vmov 0.0   ;;  %v495_v7 = vld [vmem:[%s764_s1 + $0x168] sm:$0xff] }
  0x15   : > { %v481_v3 = vld [vmem:[%s764_s1 + $0xf8] sm:$0xff]  ;;  %334 = vmatpush.msra.mxu2 %v497_v1  ;;  %v480_v5 = vld [vmem:[%s764_s1 + $0xf0] sm:$0xff]  ;;  %226 = vst [vmem:[#allocation2] sm:$0x1] %v538_v6  ;;  %v479_v9 = vld [vmem:[%s764_s1 + $0xe8] sm:$0xff] }
  0x16   : > { %269 = vmatpush.msra.mxu0 %v481_v3  ;;  %v249_v4 = vld [vmem:[%s764_s1 + $0x78] sm:$0xff]  ;;  %502 = vmatpush.msra.mxu3 %v481_v3  ;;  %v248_v8 = vld [vmem:[%s764_s1 + $0x70] sm:$0xff]  ;;  %227 = vst [vmem:[#allocation2 + $0x11] sm:$0x1] %v538_v6  ;;  %v247_v10 = vld [vmem:[%s764_s1 + $0x68] sm:$0xff] }
  0x17   : > { %292 = vmatpush.msra.mxu1 %v249_v4  ;;  %335 = vmatpush.msra.mxu2 %v496_v2  ;;  %v494_v11 = vld [vmem:[%s764_s1 + $0x160] sm:$0xff]  ;;  %v493_v14 = vld [vmem:[%s764_s1 + $0x158] sm:$0xff]  ;;  %v492_v17 = vld [vmem:[%s764_s1 + $0x150] sm:$0xff] }
  0x18   : > { %270 = vmatpush.msra.mxu0 %v480_v5  ;;  %503 = vmatpush.msra.mxu3 %v480_v5  ;;  %v478_v12 = vld [vmem:[%s764_s1 + $0xe0] sm:$0xff]  ;;  %v477_v15 = vld [vmem:[%s764_s1 + $0xd8] sm:$0xff]  ;;  %v476_v18 = vld [vmem:[%s764_s1 + $0xd0] sm:$0xff] }
  0x19   : > { %293 = vmatpush.msra.mxu1 %v248_v8  ;;  %336 = vmatpush.msra.mxu2 %v495_v7  ;;  %v246_v13 = vld [vmem:[%s764_s1 + $0x60] sm:$0xff]  ;;  %v245_v16 = vld [vmem:[%s764_s1 + $0x58] sm:$0xff]  ;;  %v244_v19 = vld [vmem:[%s764_s1 + $0x50] sm:$0xff] }
  0x1a   : > { %271 = vmatpush.msra.mxu0 %v479_v9  ;;  %504 = vmatpush.msra.mxu3 %v479_v9  ;;  %v491_v20 = vld [vmem:[%s764_s1 + $0x148] sm:$0xff]  ;;  %v490_v23 = vld [vmem:[%s764_s1 + $0x140] sm:$0xff]  ;;  %v489_v26 = vld [vmem:[%s764_s1 + $0x138] sm:$0xff] }
  0x1b   : > { %294 = vmatpush.msra.mxu1 %v247_v10  ;;  %337 = vmatpush.msra.mxu2 %v494_v11  ;;  %v475_v21 = vld [vmem:[%s764_s1 + $0xc8] sm:$0xff]  ;;  %v474_v24 = vld [vmem:[%s764_s1 + $0xc0] sm:$0xff]  ;;  %v473_v27 = vld [vmem:[%s764_s1 + $0xb8] sm:$0xff] }
  0x1c   : > { %272 = vmatpush.msra.mxu0 %v478_v12  ;;  %505 = vmatpush.msra.mxu3 %v478_v12  ;;  %v243_v22 = vld [vmem:[%s764_s1 + $0x48] sm:$0xff]  ;;  %v242_v25 = vld [vmem:[%s764_s1 + $0x40] sm:$0xff]  ;;  %v241_v29 = vld [vmem:[%s764_s1 + $0x38] sm:$0xff] }
  0x1d   : > { %295 = vmatpush.msra.mxu1 %v246_v13  ;;  %338 = vmatpush.msra.mxu2 %v493_v14  ;;  %v672_v28 = vld [vmem:[%s580_s24] sm:$0xff]  ;;  %v229_v30 = vld [vmem:[%s580_s24 + $0x8] sm:$0xff]  ;;  %v488_v31 = vld [vmem:[%s764_s1 + $0x130] sm:$0xff] }
  0x1e   : > { %273 = vmatpush.msra.mxu0 %v477_v15  ;;  %506 = vmatpush.msra.mxu3 %v477_v15  ;;  %230 = vst [vmem:[#allocation2 + $0x1] sm:$0xff] %v672_v28  ;;  %v472_v32 = vld [vmem:[%s764_s1 + $0xb0] sm:$0xff]  ;;  %v487_v34 = vld [vmem:[%s764_s1 + $0x128] sm:$0xff]  ;;  %v486_v37 = vld [vmem:[%s764_s1 + $0x120] sm:$0xff] }
  0x1f   : > { %296 = vmatpush.msra.mxu1 %v245_v16  ;;  %339 = vmatpush.msra.mxu2 %v492_v17  ;;  %231 = vst [vmem:[#allocation2 + $0x9] sm:$0xff] %v229_v30  ;;  %v240_v33 = vld [vmem:[%s764_s1 + $0x30] sm:$0xff]  ;;  %v471_v35 = vld [vmem:[%s764_s1 + $0xa8] sm:$0xff]  ;;  %v470_v38 = vld [vmem:[%s764_s1 + $0xa0] sm:$0xff] }
  0x20   : > { %274 = vmatpush.msra.mxu0 %v476_v18  ;;  %507 = vmatpush.msra.mxu3 %v476_v18  ;;  %v239_v36 = vld [vmem:[%s764_s1 + $0x28] sm:$0xff]  ;;  %v238_v39 = vld [vmem:[%s764_s1 + $0x20] sm:$0xff]  ;;  %v485_v40 = vld [vmem:[%s764_s1 + $0x118] sm:$0xff] }
  0x21   : > { %297 = vmatpush.msra.mxu1 %v244_v19  ;;  %340 = vmatpush.msra.mxu2 %v491_v20  ;;  %v469_v41 = vld [vmem:[%s764_s1 + $0x98] sm:$0xff]  ;;  %v484_v43 = vld [vmem:[%s764_s1 + $0x110] sm:$0xff]  ;;  %v483_v46 = vld [vmem:[%s764_s1 + $0x108] sm:$0xff] }
  0x22   : > { %275 = vmatpush.msra.mxu0 %v475_v21  ;;  %508 = vmatpush.msra.mxu3 %v475_v21  ;;  %v237_v42 = vld [vmem:[%s764_s1 + $0x18] sm:$0xff]  ;;  %v468_v44 = vld [vmem:[%s764_s1 + $0x90] sm:$0xff]  ;;  %v467_v47 = vld [vmem:[%s764_s1 + $0x88] sm:$0xff] }
  0x23   : > { %298 = vmatpush.msra.mxu1 %v243_v22  ;;  %341 = vmatpush.msra.mxu2 %v490_v23  ;;  %v236_v45 = vld [vmem:[%s764_s1 + $0x10] sm:$0xff]  ;;  %v235_v48 = vld [vmem:[%s764_s1 + $0x8] sm:$0xff]  ;;  %v482_v49 = vld [vmem:[%s764_s1 + $0x100] sm:$0xff] }
  0x24   : > { %276 = vmatpush.msra.mxu0 %v474_v24  ;;  %509 = vmatpush.msra.mxu3 %v474_v24  ;;  %v466_v50 = vld [vmem:[%s764_s1 + $0x80] sm:$0xff] }
  0x25   : > { %299 = vmatpush.msra.mxu1 %v242_v25  ;;  %342 = vmatpush.msra.mxu2 %v489_v26  ;;  %v234_v52 = vld [vmem:[%s764_s1] sm:$0xff] }
  0x26   : > { %277 = vmatpush.msra.mxu0 %v473_v27  ;;  %510 = vmatpush.msra.mxu3 %v473_v27  ;;  %v315_v51 = vld [vmem:[#allocation2 + $0x2] sm:$0xff]  ;;  %v316_v54 = vld [vmem:[#allocation2 + $0xa] sm:$0xff]  ;;  %v528_v59 = vld [vmem:[%s765_s2] ss:$0 sm:$0xff] }
  0x27   : > { %300 = vmatpush.msra.mxu1 %v241_v29  ;;  %343 = vmatpush.msra.mxu2 %v488_v31  ;;  %v232_v53 = vld [vmem:[#allocation2] sm:$0xff]  ;;  %v233_v55 = vld [vmem:[#allocation2 + $0x8] sm:$0xff] }
  0x28   : > { %278 = vmatpush.msra.mxu0 %v472_v32  ;;  %511 = vmatpush.msra.mxu3 %v472_v32  ;;  %v367_v18 = vld [vmem:[%s767_s4] sm:$0x1] }
  0x29   : > { %301 = vmatpush.msra.mxu1 %v240_v33  ;;  %344 = vmatpush.msra.mxu2 %v487_v34  ;;  %v377_v21 = vld [vmem:[%s768_s5] sm:$0x1] }
  0x2a   : > { %279 = vmatpush.msra.mxu0 %v471_v35  ;;  %512 = vmatpush.msra.mxu3 %v471_v35 }
  0x2b   : > { %302 = vmatpush.msra.mxu1 %v239_v36  ;;  %345 = vmatpush.msra.mxu2 %v486_v37 }
  0x2c   : > { %280 = vmatpush.msra.mxu0 %v470_v38  ;;  %513 = vmatpush.msra.mxu3 %v470_v38 }
  0x2d   : > { %303 = vmatpush.msra.mxu1 %v238_v39  ;;  %346 = vmatpush.msra.mxu2 %v485_v40 }
  0x2e   : > { %281 = vmatpush.msra.mxu0 %v469_v41  ;;  %514 = vmatpush.msra.mxu3 %v469_v41 }
  0x2f   : > { %304 = vmatpush.msra.mxu1 %v237_v42  ;;  %347 = vmatpush.msra.mxu2 %v484_v43 }
  0x30   : > { %282 = vmatpush.msra.mxu0 %v468_v44  ;;  %515 = vmatpush.msra.mxu3 %v468_v44 }
  0x31   : > { %305 = vmatpush.msra.mxu1 %v236_v45  ;;  %348 = vmatpush.msra.mxu2 %v483_v46 }
  0x32   : > { %283 = vmatpush.msra.mxu0 %v467_v47  ;;  %516 = vmatpush.msra.mxu3 %v467_v47 }
  0x33   : > { %306 = vmatpush.msra.mxu1 %v235_v48  ;;  %349 = vmatpush.msra.mxu2 %v482_v49 }
  0x34   : > { %284 = vmatpush.msra.mxu0 %v466_v50  ;;  %350 = vmatmul.f32.vlgmr.msra.gmra.mxu2 %v315_v51 }
  0x35   : > { %307 = vmatpush.msra.mxu1 %v234_v52  ;;  %285 = vmatmul.f32.vlgmr.msra.gmra.mxu0 %v672_v28 }
  0x36   : > { %308 = vmatmul.f32.vlgmr.msra.gmra.mxu1 %v232_v53  ;;  %517 = vmatpush.msra.mxu3 %v466_v50 }
  0x37   : > { %288 = vmatmul.f32.vlgmr.msra.gmra.mxu3 %v229_v30 }
  0x3c   : > { %353 = vmatmul.f32.gmra.mxu2 %v316_v54 }
  0x3e   : > { %311 = vmatmul.f32.gmra.mxu1 %v233_v55 }
  0xb2   : > { %v286_v56 = vpop.f32.mrf.mxu0 }
  0xb3   : > { %v309_v57 = vpop.f32.mrf.mxu1 }
  0xb4   : > { %v310_v58 = vadd.f32 %v309_v57, %v286_v56 }
  0xb7   : > { %v351_v60 = vpop.f32.mrf.mxu2 }
  0xb8   : > { %v357_v61 = vadd.f32 %v351_v60, %v310_v58 }
  0xba   : > { %v363_v62 = vadd.f32 %v528_v59, %v357_v61  ;;  %v289_v63 = vpop.f32.mrf.mxu3 }
  0xbb   : > { %v312_v0 = vpop.f32.mrf.mxu1 }
  0xbc   : > { %365 = vst [vmem:[%s585_s27] sm:$0xff] %v363_v62  ;;  %v313_v1 = vadd.f32 %v312_v0, %v289_v63  ;;  %v378_v5 = vmul.f32 %v363_v62, %v363_v62 }
  0xbf   : > { %v354_v2 = vpop.f32.mrf.mxu2 }
  0xc0   : > { %v358_v3 = vadd.f32 %v354_v2, %v313_v1 }
  0xc2   : > { %v364_v4 = vadd.f32 %v528_v59, %v358_v3 }
  0xc4   : > { %366 = vst [vmem:[%s585_s27 + $0x8] sm:$0xff] %v364_v4  ;;  %v368_v6 = vadd.f32 %v364_v4, %v363_v62  ;;  %v379_v7 = vmul.f32 %v364_v4, %v364_v4 }
  0xc6   : > { %v369_v8 = vrot.slane %v368_v6, 4  ;;  %v380_v9 = vadd.f32 %v379_v7, %v378_v5 }
  0xc8   : > { %v370_v10 = vadd.f32 %v369_v8, %v368_v6  ;;  %v381_v11 = vrot.slane %v380_v9, 4 }
  0xca   : > { %v371_v12 = vrot.slane %v370_v10, 2  ;;  %v382_v13 = vadd.f32 %v381_v11, %v380_v9 }
  0xcc   : > { %v372_v14 = vadd.f32 %v371_v12, %v370_v10  ;;  %v383_v15 = vrot.slane %v382_v13, 2 }
  0xce   : > { %v373_v16 = vrot.slane %v372_v14, 1  ;;  %v384_v17 = vadd.f32 %v383_v15, %v382_v13 }
  0xd0   : > { %v374_v19 = vadd.f32 %v373_v16, %v372_v14  ;;  %v385_v20 = vrot.slane %v384_v17, 1 }
  0xd2   : > { %v375_v22 = vadd.f32 %v374_v19, %v367_v18  ;;  %v386_v23 = vadd.f32 %v385_v20, %v384_v17 }
  0xd4   : > { %376 = vst [vmem:[%s767_s4] sm:$0x1] %v375_v22  ;;  %v387_v24 = vadd.f32 %v386_v23, %v377_v21 }
  0xd6   : > { %388 = vst [vmem:[%s768_s5] sm:$0x1] %v387_v24 }
  0xd7 PF: > { %s16_s18 = sadd.s32 1, %s535_s18  }
  0xd8   : > { %p13_p5 = scmp.ge.s32.totalorder %s16_s18, 4  }
  0xda   :  { %15 = sbr.rel (!%p13_p5) target bundleno = 1 (0x1), region = 84 }

// kernel: tile.28
= control target key start
LH: loop header
LB: loop body
LE: loop exit
PB: predicated region body
PF: predicated region fallthrough
CT: control target
= control target key end

     0   :  { %s40_s0 = inlined_call_operand.vmem [shape: f32[16], index: 0, kind: input, shape index: {}]   ;;  %s41_s1 = inlined_call_operand.vmem [shape: f32[32,16], index: 1, kind: output, shape index: {}]  }
   0x1   :  { %v4_v0 = vld [vmem:[%s40_s0] ss:$0 sm:$0xff] }
   0x2   :  { %5 = vst [vmem:[%s41_s1] sm:$0xff] %v4_v0 }
   0x3   :  { %12 = vst [vmem:[%s41_s1 + $0x8] sm:$0xff] %v4_v0 }
   0x4   :  { %13 = vst [vmem:[%s41_s1 + $0x10] sm:$0xff] %v4_v0 }
   0x5   :  { %14 = vst [vmem:[%s41_s1 + $0x18] sm:$0xff] %v4_v0 }

// kernel: tile.29
= control target key start
LH: loop header
LB: loop body
LE: loop exit
PB: predicated region body
PF: predicated region fallthrough
CT: control target
= control target key end

     0   :  { %s88_s8 = smov 112   ;;  %s89_s11 = smov 80   ;;  %vm3_vm0 = vcmask 130048   ;;  %vm9_vm1 = vcmask 1048448   ;;  %vm15_vm2 = vcmask 917248   ;;  %vm21_vm3 = vcmask 786048   ;;  %s141_s0 = inlined_call_operand.vmem [shape: f32[32,16], index: 0, kind: input, shape index: {}]   ;;  %s142_s1 = inlined_call_operand.vmem [shape: f32[1,512], index: 1, kind: output, shape index: {}]  }
   0x1   :  { %v71_v0 = vld [vmem:[%s141_s0 + $0x7] ss:$8 sm:$0xf]   ;;  %v73_v1 = vld [vmem:[%s141_s0 + $0x5] ss:$8 sm:$0xf]  }
   0x2   :  { %7 = vrot.lane.b32.xlu0 %v71_v0, %s88_s8  ;;  %19 = vrot.lane.b32.xlu1 %v73_v1, %s89_s11  ;;  %v75_v2 = vld [vmem:[%s141_s0 + $0x3] ss:$8 sm:$0xf]   ;;  %s90_s14 = smov 48   ;;  %s91_s19 = smov 96   ;;  %vm27_vm4 = vcmask 654848  }
   0x3   :  { %31 = vrot.lane.b32.xlu2 %v75_v2, %s90_s14  ;;  %v72_v3 = vld [vmem:[%s141_s0 + $0x6] ss:$8 sm:$0xf]   ;;  %v74_v4 = vld [vmem:[%s141_s0 + $0x4] ss:$8 sm:$0xf]  }
   0x4   :  { %s92_s20 = smov 64   ;;  %v76_v5 = vld [vmem:[%s141_s0 + $0x2] ss:$8 sm:$0xf]   ;;  %s93_s23 = smov 32   ;;  %vm33_vm5 = vcmask 523648  }
   0x5   :  { %v77_v6 = vld [vmem:[%s141_s0 + $0x1] ss:$8 sm:$0xf]   ;;  %s94_s26 = smov 16   ;;  %vm39_vm6 = vcmask 392448   ;;  %vm45_vm7 = vcmask 261248  }
   0x6   :  { %v2_v7 = vld [vmem:[%s141_s0] ss:$8 sm:$0xf]  }
   0x7   :  { %4 = vst.msk [vmem:[#allocation0] ss:$8 sm:$0xf] %vm3_vm0, %v2_v7  }
   0xa   :  { %13 = vrot.lane.b32.xlu0 %v72_v3, %s91_s19  ;;  %25 = vrot.lane.b32.xlu1 %v74_v4, %s92_s20 }
   0xb   :  { %37 = vrot.lane.b32.xlu2 %v76_v5, %s93_s23 }
  0x12   :  { %43 = vrot.lane.b32.xlu0 %v77_v6, %s94_s26 }
  0x5d   :  { %v32_v8 = vpop.permute.xlu2 %31  }
  0x65   :  { %v38_v9 = vpop.permute.xlu2 %37  }
  0x74   :  { %v8_v10 = vpop.permute.xlu0 %7   ;;  %v20_v11 = vpop.permute.xlu1 %19  }
  0x75   :  { %10 = vst.msk [vmem:[#allocation0] ss:$8 sm:$0xf] %vm9_vm1, %v8_v10  }
  0x7c   :  { %v14_v12 = vpop.permute.xlu0 %13   ;;  %v26_v13 = vpop.permute.xlu1 %25  }
  0x7d   :  { %16 = vst.msk [vmem:[#allocation0] ss:$8 sm:$0xf] %vm15_vm2, %v14_v12  }
  0x7e   :  { %22 = vst.msk [vmem:[#allocation0] ss:$8 sm:$0xf] %vm21_vm3, %v20_v11  }
  0x7f   :  { %28 = vst.msk [vmem:[#allocation0] ss:$8 sm:$0xf] %vm27_vm4, %v26_v13  }
  0x80   :  { %34 = vst.msk [vmem:[#allocation0] ss:$8 sm:$0xf] %vm33_vm5, %v32_v8  }
  0x81   :  { %40 = vst.msk [vmem:[#allocation0] ss:$8 sm:$0xf] %vm39_vm6, %v38_v9  }
  0x84   :  { %v44_v14 = vpop.permute.xlu0 %43  }
  0x85   :  { %46 = vst.msk [vmem:[#allocation0] ss:$8 sm:$0xf] %vm45_vm7, %v44_v14  }
  0x8c   :  { %v49_v15 = vld [vmem:[#allocation0] sm:$0x1]  ;;  %v54_v16 = vld [vmem:[#allocation0 + $0x8] sm:$0x1]  ;;  %v60_v17 = vld [vmem:[#allocation0 + $0x10] sm:$0x1] }
  0x8d   :  { %52 = vst [vmem:[%s142_s1] sm:$0x1] %v49_v15  ;;  %v66_v18 = vld [vmem:[#allocation0 + $0x18] sm:$0x1] }
  0x8e   :  { %78 = vst [vmem:[%s142_s1 + $0x1] sm:$0x1] %v54_v16 }
  0x8f   :  { %79 = vst [vmem:[%s142_s1 + $0x2] sm:$0x1] %v60_v17 }
  0x90   :  { %80 = vst [vmem:[%s142_s1 + $0x3] sm:$0x1] %v66_v18 }

// kernel: upsampler_forward.3
= control target key start
LH: loop header
LB: loop body
LE: loop exit
PB: predicated region body
PF: predicated region fallthrough
CT: control target
= control target key end

     0   :  { %s1187_s21 = smov 0   ;;  %s1887_s0 = inlined_call_operand.vmem [shape: f32[2,16,128], index: 0, kind: input, shape index: {}]   ;;  %s1888_s1 = inlined_call_operand.vmem [shape: f32[1,128], index: 1, kind: input, shape index: {}]   ;;  %s1889_s2 = inlined_call_operand.vmem [shape: f32[1,128], index: 2, kind: input, shape index: {}]   ;;  %s1890_s3 = inlined_call_operand.vmem [shape: f32[32,16], index: 3, kind: input, shape index: {}]   ;;  %s1891_s4 = inlined_call_operand.vmem [shape: f32[3,128,512], index: 4, kind: input, shape index: {}]   ;;  %s1892_s5 = inlined_call_operand.vmem [shape: f32[1,512], index: 5, kind: input, shape index: {}]   ;;  %s1893_s6 = inlined_call_operand.vmem [shape: f32[2,32,512], index: 6, kind: output, shape index: {}]  }
   0x1 LB: > { %s987_s22 = sadd.s32 4294967295, %s1149_s21   ;;  %p991_p0 = scmp.ge.s32.totalorder %s1149_s21, 1  ;;  %s1149_s21 = sphi %s1187_s21, %s16_s21  }
   0x2   : > { %p212_p1 = scmp.lt.s32.totalorder %s1149_s21, 3 }
   0x4   : > { %p213_p2 = pnand %p991_p0, %p212_p1 }
   0x5   : > { %p242_p3 = scmp.lt.s32.totalorder (!%p213_p2), %s987_s22, 1 }
   0x6   : > { %216 = sbr.rel (%p213_p2) target bundleno = 376 (0x178), region = 44 }
   0xb   : > { %s1895_s22 = smov (!%p242_p3, %s987_s22), 1  ;;  %v1141_v0 = vld [vmem:[%s1888_s1] ss:$0 sm:$0xff]  ;;  %v1061_v7 = vld [vmem:[%s1891_s4 + $0x3e8] sm:$0xff]  ;;  %v1062_v8 = vld [vmem:[%s1891_s4 + $0x3f0] sm:$0xff]  ;;  %vm274_vm0 = vcmask 130048  }
   0xc   : > { %s1130_s25 = sshll.u32 %s1895_s22, 4  ;;  %v1142_v1 = vld [vmem:[%s1889_s2] ss:$0 sm:$0xff]  ;;  %486 = vmatpush.msra.mxu2 %v1061_v7  ;;  %v1057_v12 = vld [vmem:[%s1891_s4 + $0x3c8] sm:$0xff]  ;;  %515 = vmatpush.msra.mxu3 %v1062_v8  ;;  %v1058_v13 = vld [vmem:[%s1891_s4 + $0x3d0] sm:$0xff]  ;;  %s1131_s29 = sshll.u32 %s1895_s22, 7 }
   0xd   : > { %s246_s28 = scalar_lea.vmem %s1887_s0, %s1130_s25  ;;  %v1060_v6 = vld [vmem:[%s1891_s4 + $0x3e0] sm:$0xff]  ;;  %v1053_v17 = vld [vmem:[%s1891_s4 + $0x3a8] sm:$0xff]  ;;  %v1054_v18 = vld [vmem:[%s1891_s4 + $0x3b0] sm:$0xff]  ;;  %s1834_s8 = scalar_lea.vmem %s1893_s6, %s1131_s29 }
   0xe   : > { %v253_v2 = vld [vmem:[%s246_s28 + $0x8] sm:$0xff]  ;;  %v252_v3 = vld [vmem:[%s246_s28] sm:$0xff]  ;;  %457 = vmatpush.msra.mxu1 %v1060_v6  ;;  %487 = vmatpush.msra.mxu2 %v1057_v12  ;;  %v1063_v22 = vld [vmem:[%s1891_s4 + $0x3f8] sm:$0xff] }
   0xf   : > { %v259_v4 = vmul.f32 %v1141_v0, %v253_v2  ;;  %v258_v5 = vmul.f32 %v1141_v0, %v252_v3  ;;  %v1056_v11 = vld [vmem:[%s1891_s4 + $0x3c0] sm:$0xff]  ;;  %516 = vmatpush.msra.mxu3 %v1058_v13  ;;  %v1049_v21 = vld [vmem:[%s1891_s4 + $0x388] sm:$0xff]  ;;  %v1050_v23 = vld [vmem:[%s1891_s4 + $0x390] sm:$0xff] }
  0x10   : > { %v1052_v14 = vld [vmem:[%s1891_s4 + $0x3a0] sm:$0xff]  ;;  %458 = vmatpush.msra.mxu1 %v1056_v11  ;;  %488 = vmatpush.msra.mxu2 %v1053_v17  ;;  %v1045_v25 = vld [vmem:[%s1891_s4 + $0x368] sm:$0xff]  ;;  %v1059_v26 = vld [vmem:[%s1891_s4 + $0x3d8] sm:$0xff]  ;;  %v1151_v17 = vmov 0.0  }
  0x11   : > { %v265_v9 = vadd.f32 %v1142_v1, %v259_v4  ;;  %v264_v10 = vadd.f32 %v1142_v1, %v258_v5  ;;  %v1048_v19 = vld [vmem:[%s1891_s4 + $0x380] sm:$0xff]  ;;  %517 = vmatpush.msra.mxu3 %v1054_v18  ;;  %v1046_v27 = vld [vmem:[%s1891_s4 + $0x370] sm:$0xff]  ;;  %v1041_v29 = vld [vmem:[%s1891_s4 + $0x348] sm:$0xff]  ;;  %268 = vst [vmem:[#allocation2] sm:$0x1] %v1151_v17 }
  0x12   : > { %v270_v20 = vld [vmem:[%s1890_s3] sm:$0xff]  ;;  %459 = vmatpush.msra.mxu1 %v1052_v14  ;;  %489 = vmatpush.msra.mxu2 %v1049_v21  ;;  %v1055_v30 = vld [vmem:[%s1891_s4 + $0x3b8] sm:$0xff]  ;;  %v1042_v31 = vld [vmem:[%s1891_s4 + $0x350] sm:$0xff]  ;;  %269 = vst [vmem:[#allocation2 + $0x21] sm:$0x1] %v1151_v17 }
  0x13   : > { %v267_v15 = vmax.f32 %v265_v9, 0.0  ;;  %v266_v16 = vmax.f32 %v264_v10, 0.0  ;;  %v1044_v24 = vld [vmem:[%s1891_s4 + $0x360] sm:$0xff]  ;;  %518 = vmatpush.msra.mxu3 %v1050_v23  ;;  %v1037_v33 = vld [vmem:[%s1891_s4 + $0x328] sm:$0xff]  ;;  %v1051_v34 = vld [vmem:[%s1891_s4 + $0x398] sm:$0xff] }
  0x14   : > { %460 = vmatpush.msra.mxu1 %v1048_v19  ;;  %v1040_v28 = vld [vmem:[%s1891_s4 + $0x340] sm:$0xff]  ;;  %490 = vmatpush.msra.mxu2 %v1045_v25  ;;  %v1038_v35 = vld [vmem:[%s1891_s4 + $0x330] sm:$0xff]  ;;  %v271_v36 = vld [vmem:[%s1890_s3 + $0x8] sm:$0xff] }
  0x15   : > { %301 = vmatpush.msra.mxu0 %v267_v15  ;;  %519 = vmatpush.msra.mxu3 %v1046_v27  ;;  %v1036_v32 = vld [vmem:[%s1891_s4 + $0x320] sm:$0xff]  ;;  %v1047_v38 = vld [vmem:[%s1891_s4 + $0x378] sm:$0xff]  ;;  %v1033_v39 = vld [vmem:[%s1891_s4 + $0x308] sm:$0xff] }
  0x16   : > { %461 = vmatpush.msra.mxu1 %v1044_v24  ;;  %491 = vmatpush.msra.mxu2 %v1041_v29  ;;  %v1032_v37 = vld [vmem:[%s1891_s4 + $0x300] sm:$0xff]  ;;  %v1034_v40 = vld [vmem:[%s1891_s4 + $0x310] sm:$0xff]  ;;  %v1043_v42 = vld [vmem:[%s1891_s4 + $0x358] sm:$0xff] }
  0x17   : > { %302 = vmatpush.msra.mxu0 %v266_v16  ;;  %520 = vmatpush.msra.mxu3 %v1042_v31  ;;  %v1028_v41 = vld [vmem:[%s1891_s4 + $0x2e0] sm:$0xff]  ;;  %v1029_v43 = vld [vmem:[%s1891_s4 + $0x2e8] sm:$0xff]  ;;  %v1030_v44 = vld [vmem:[%s1891_s4 + $0x2f0] sm:$0xff] }
  0x18   : > { %996 = vmatmul.msk.f32.vlgmr.msra.gmra.mxu0 %vm274_vm0, %v270_v20  ;;  %462 = vmatpush.msra.mxu1 %v1040_v28  ;;  %v1024_v45 = vld [vmem:[%s1891_s4 + $0x2c0] sm:$0xff]  ;;  %v1039_v46 = vld [vmem:[%s1891_s4 + $0x338] sm:$0xff]  ;;  %v1025_v47 = vld [vmem:[%s1891_s4 + $0x2c8] sm:$0xff] }
  0x19   : > { %544 = vmatpush.msrb.mxu0 %v1063_v22  ;;  %492 = vmatpush.msra.mxu2 %v1037_v33  ;;  %v1026_v48 = vld [vmem:[%s1891_s4 + $0x2d0] sm:$0xff]  ;;  %v1020_v49 = vld [vmem:[%s1891_s4 + $0x2a0] sm:$0xff]  ;;  %v1035_v50 = vld [vmem:[%s1891_s4 + $0x318] sm:$0xff] }
  0x1a   : > { %463 = vmatpush.msra.mxu1 %v1036_v32  ;;  %521 = vmatpush.msra.mxu3 %v1038_v35  ;;  %v1021_v51 = vld [vmem:[%s1891_s4 + $0x2a8] sm:$0xff]  ;;  %v272_v52 = vld [vmem:[%s1890_s3 + $0x10] sm:$0xff]  ;;  %v1031_v54 = vld [vmem:[%s1891_s4 + $0x2f8] sm:$0xff] }
  0x1b   : > { %545 = vmatpush.msrb.mxu0 %v1059_v26  ;;  %493 = vmatpush.msra.mxu2 %v1033_v39  ;;  %v1022_v53 = vld [vmem:[%s1891_s4 + $0x2b0] sm:$0xff]  ;;  %v1027_v55 = vld [vmem:[%s1891_s4 + $0x2d8] sm:$0xff]  ;;  %v1016_v58 = vld [vmem:[%s1891_s4 + $0x280] sm:$0xff] }
  0x1c   : > { %464 = vmatpush.msra.mxu1 %v1032_v37  ;;  %522 = vmatpush.msra.mxu3 %v1034_v40  ;;  %v1023_v56 = vld [vmem:[%s1891_s4 + $0x2b8] sm:$0xff]  ;;  %v1017_v59 = vld [vmem:[%s1891_s4 + $0x288] sm:$0xff]  ;;  %v1018_v60 = vld [vmem:[%s1891_s4 + $0x290] sm:$0xff] }
  0x1d   : > { %546 = vmatpush.msrb.mxu0 %v1055_v30  ;;  %494 = vmatpush.msra.mxu2 %v1029_v43  ;;  %v273_v57 = vld [vmem:[%s1890_s3 + $0x18] sm:$0xff]  ;;  %v1012_v62 = vld [vmem:[%s1891_s4 + $0x260] sm:$0xff]  ;;  %v1013_v63 = vld [vmem:[%s1891_s4 + $0x268] sm:$0xff] }
  0x1e   : > { %465 = vmatpush.msra.mxu1 %v1028_v41  ;;  %523 = vmatpush.msra.mxu3 %v1030_v44  ;;  %v1019_v61 = vld [vmem:[%s1891_s4 + $0x298] sm:$0xff]  ;;  %v1014_v0 = vld [vmem:[%s1891_s4 + $0x270] sm:$0xff]  ;;  %v1008_v2 = vld [vmem:[%s1891_s4 + $0x240] sm:$0xff] }
  0x1f   : > { %547 = vmatpush.msrb.mxu0 %v1051_v34  ;;  %495 = vmatpush.msra.mxu2 %v1025_v47  ;;  %v1015_v1 = vld [vmem:[%s1891_s4 + $0x278] sm:$0xff]  ;;  %v1009_v3 = vld [vmem:[%s1891_s4 + $0x248] sm:$0xff]  ;;  %v1010_v4 = vld [vmem:[%s1891_s4 + $0x250] sm:$0xff] }
  0x20   : > { %997 = vmatmul.msk.f32.gmra.mxu0 %vm274_vm0, %v271_v36  ;;  %466 = vmatpush.msra.mxu1 %v1024_v45  ;;  %v1011_v5 = vld [vmem:[%s1891_s4 + $0x258] sm:$0xff]  ;;  %v1004_v6 = vld [vmem:[%s1891_s4 + $0x220] sm:$0xff]  ;;  %v1005_v7 = vld [vmem:[%s1891_s4 + $0x228] sm:$0xff] }
  0x21   : > { %548 = vmatpush.msrb.mxu0 %v1047_v38  ;;  %524 = vmatpush.msra.mxu3 %v1026_v48  ;;  %v1006_v8 = vld [vmem:[%s1891_s4 + $0x230] sm:$0xff]  ;;  %v1007_v9 = vld [vmem:[%s1891_s4 + $0x238] sm:$0xff]  ;;  %v1000_v10 = vld [vmem:[%s1891_s4 + $0x200] sm:$0xff] }
  0x22   : > { %467 = vmatpush.msra.mxu1 %v1020_v49  ;;  %496 = vmatpush.msra.mxu2 %v1021_v51  ;;  %v1001_v11 = vld [vmem:[%s1891_s4 + $0x208] sm:$0xff]  ;;  %v1002_v12 = vld [vmem:[%s1891_s4 + $0x210] sm:$0xff]  ;;  %v1003_v13 = vld [vmem:[%s1891_s4 + $0x218] sm:$0xff] }
  0x23   : > { %549 = vmatpush.msrb.mxu0 %v1043_v42  ;;  %525 = vmatpush.msra.mxu3 %v1022_v53  ;;  %v385_v14 = vld [vmem:[%s1891_s4 + $0x1e8] sm:$0xff]  ;;  %v386_v15 = vld [vmem:[%s1891_s4 + $0x1f0] sm:$0xff]  ;;  %v384_v16 = vld [vmem:[%s1891_s4 + $0x1e0] sm:$0xff] }
  0x24   : > { %468 = vmatpush.msra.mxu1 %v1016_v58  ;;  %497 = vmatpush.msra.mxu2 %v1017_v59  ;;  %v387_v18 = vld [vmem:[%s1891_s4 + $0x1f8] sm:$0xff]  ;;  %v381_v19 = vld [vmem:[%s1891_s4 + $0x1c8] sm:$0xff]  ;;  %v382_v20 = vld [vmem:[%s1891_s4 + $0x1d0] sm:$0xff] }
  0x25   : > { %550 = vmatpush.msrb.mxu0 %v1039_v46  ;;  %526 = vmatpush.msra.mxu3 %v1018_v60  ;;  %v380_v21 = vld [vmem:[%s1891_s4 + $0x1c0] sm:$0xff]  ;;  %v383_v22 = vld [vmem:[%s1891_s4 + $0x1d8] sm:$0xff]  ;;  %v377_v23 = vld [vmem:[%s1891_s4 + $0x1a8] sm:$0xff] }
  0x26   : > { %469 = vmatpush.msra.mxu1 %v1012_v62  ;;  %498 = vmatpush.msra.mxu2 %v1013_v63  ;;  %v378_v24 = vld [vmem:[%s1891_s4 + $0x1b0] sm:$0xff]  ;;  %v376_v25 = vld [vmem:[%s1891_s4 + $0x1a0] sm:$0xff]  ;;  %v379_v26 = vld [vmem:[%s1891_s4 + $0x1b8] sm:$0xff] }
  0x27   : > { %551 = vmatpush.msrb.mxu0 %v1035_v50  ;;  %527 = vmatpush.msra.mxu3 %v1014_v0  ;;  %v373_v27 = vld [vmem:[%s1891_s4 + $0x188] sm:$0xff]  ;;  %v374_v28 = vld [vmem:[%s1891_s4 + $0x190] sm:$0xff]  ;;  %v372_v29 = vld [vmem:[%s1891_s4 + $0x180] sm:$0xff] }
  0x28   : > { %998 = vmatmul.msk.f32.gmra.mxu0 %vm274_vm0, %v272_v52  ;;  %470 = vmatpush.msra.mxu1 %v1008_v2  ;;  %v375_v30 = vld [vmem:[%s1891_s4 + $0x198] sm:$0xff]  ;;  %v369_v31 = vld [vmem:[%s1891_s4 + $0x168] sm:$0xff]  ;;  %v370_v32 = vld [vmem:[%s1891_s4 + $0x170] sm:$0xff] }
  0x29   : > { %552 = vmatpush.msrb.mxu0 %v1031_v54  ;;  %499 = vmatpush.msra.mxu2 %v1009_v3  ;;  %v368_v33 = vld [vmem:[%s1891_s4 + $0x160] sm:$0xff]  ;;  %v371_v34 = vld [vmem:[%s1891_s4 + $0x178] sm:$0xff]  ;;  %v365_v35 = vld [vmem:[%s1891_s4 + $0x148] sm:$0xff] }
  0x2a   : > { %528 = vmatpush.msra.mxu3 %v1010_v4  ;;  %471 = vmatpush.msra.mxu1 %v1004_v6  ;;  %v366_v36 = vld [vmem:[%s1891_s4 + $0x150] sm:$0xff]  ;;  %v364_v37 = vld [vmem:[%s1891_s4 + $0x140] sm:$0xff]  ;;  %v367_v38 = vld [vmem:[%s1891_s4 + $0x158] sm:$0xff] }
  0x2b   : > { %553 = vmatpush.msrb.mxu0 %v1027_v55  ;;  %500 = vmatpush.msra.mxu2 %v1005_v7  ;;  %v361_v39 = vld [vmem:[%s1891_s4 + $0x128] sm:$0xff]  ;;  %v362_v40 = vld [vmem:[%s1891_s4 + $0x130] sm:$0xff]  ;;  %v360_v41 = vld [vmem:[%s1891_s4 + $0x120] sm:$0xff] }
  0x2c   : > { %529 = vmatpush.msra.mxu3 %v1006_v8  ;;  %472 = vmatpush.msra.mxu1 %v1000_v10  ;;  %v363_v42 = vld [vmem:[%s1891_s4 + $0x138] sm:$0xff]  ;;  %v357_v43 = vld [vmem:[%s1891_s4 + $0x108] sm:$0xff]  ;;  %v358_v44 = vld [vmem:[%s1891_s4 + $0x110] sm:$0xff] }
  0x2d   : > { %554 = vmatpush.msrb.mxu0 %v1023_v56  ;;  %501 = vmatpush.msra.mxu2 %v1001_v11  ;;  %v356_v45 = vld [vmem:[%s1891_s4 + $0x100] sm:$0xff]  ;;  %v359_v46 = vld [vmem:[%s1891_s4 + $0x118] sm:$0xff]  ;;  %v353_v47 = vld [vmem:[%s1891_s4 + $0xe8] sm:$0xff] }
  0x2e   : > { %530 = vmatpush.msra.mxu3 %v1002_v12  ;;  %573 = vmatpush.msrb.mxu1 %v384_v16  ;;  %v354_v48 = vld [vmem:[%s1891_s4 + $0xf0] sm:$0xff]  ;;  %v352_v49 = vld [vmem:[%s1891_s4 + $0xe0] sm:$0xff]  ;;  %v355_v50 = vld [vmem:[%s1891_s4 + $0xf8] sm:$0xff] }
  0x2f   : > { %555 = vmatpush.msrb.mxu0 %v1019_v61  ;;  %602 = vmatpush.msrb.mxu2 %v385_v14  ;;  %v349_v51 = vld [vmem:[%s1891_s4 + $0xc8] sm:$0xff]  ;;  %v350_v52 = vld [vmem:[%s1891_s4 + $0xd0] sm:$0xff]  ;;  %v348_v53 = vld [vmem:[%s1891_s4 + $0xc0] sm:$0xff] }
  0x30   : > { %999 = vmatmul.msk.f32.gmra.mxu0 %vm274_vm0, %v273_v57  ;;  %631 = vmatpush.msrb.mxu3 %v386_v15  ;;  %v351_v54 = vld [vmem:[%s1891_s4 + $0xd8] sm:$0xff]  ;;  %v345_v55 = vld [vmem:[%s1891_s4 + $0xa8] sm:$0xff]  ;;  %v346_v56 = vld [vmem:[%s1891_s4 + $0xb0] sm:$0xff] }
  0x31   : > { %556 = vmatpush.msrb.mxu0 %v1015_v1  ;;  %603 = vmatpush.msrb.mxu2 %v381_v19  ;;  %v344_v57 = vld [vmem:[%s1891_s4 + $0xa0] sm:$0xff]  ;;  %v347_v58 = vld [vmem:[%s1891_s4 + $0xb8] sm:$0xff]  ;;  %v341_v59 = vld [vmem:[%s1891_s4 + $0x88] sm:$0xff] }
  0x32   : > { %632 = vmatpush.msrb.mxu3 %v382_v20  ;;  %574 = vmatpush.msrb.mxu1 %v380_v21  ;;  %v342_v60 = vld [vmem:[%s1891_s4 + $0x90] sm:$0xff]  ;;  %v340_v61 = vld [vmem:[%s1891_s4 + $0x80] sm:$0xff]  ;;  %v343_v62 = vld [vmem:[%s1891_s4 + $0x98] sm:$0xff] }
  0x33   : > { %557 = vmatpush.msrb.mxu0 %v1011_v5  ;;  %604 = vmatpush.msrb.mxu2 %v377_v23  ;;  %v337_v63 = vld [vmem:[%s1891_s4 + $0x68] sm:$0xff]  ;;  %v338_v0 = vld [vmem:[%s1891_s4 + $0x70] sm:$0xff]  ;;  %v336_v1 = vld [vmem:[%s1891_s4 + $0x60] sm:$0xff] }
  0x34   : > { %633 = vmatpush.msrb.mxu3 %v378_v24  ;;  %575 = vmatpush.msrb.mxu1 %v376_v25  ;;  %v339_v2 = vld [vmem:[%s1891_s4 + $0x78] sm:$0xff]  ;;  %v333_v3 = vld [vmem:[%s1891_s4 + $0x48] sm:$0xff]  ;;  %v334_v4 = vld [vmem:[%s1891_s4 + $0x50] sm:$0xff] }
  0x35   : > { %558 = vmatpush.msrb.mxu0 %v1007_v9  ;;  %605 = vmatpush.msrb.mxu2 %v373_v27  ;;  %v332_v5 = vld [vmem:[%s1891_s4 + $0x40] sm:$0xff]  ;;  %v335_v6 = vld [vmem:[%s1891_s4 + $0x58] sm:$0xff]  ;;  %v329_v7 = vld [vmem:[%s1891_s4 + $0x28] sm:$0xff] }
  0x36   : > { %634 = vmatpush.msrb.mxu3 %v374_v28  ;;  %576 = vmatpush.msrb.mxu1 %v372_v29  ;;  %v330_v8 = vld [vmem:[%s1891_s4 + $0x30] sm:$0xff]  ;;  %v328_v9 = vld [vmem:[%s1891_s4 + $0x20] sm:$0xff]  ;;  %v331_v10 = vld [vmem:[%s1891_s4 + $0x38] sm:$0xff] }
  0x37   : > { %559 = vmatpush.msrb.mxu0 %v1003_v13  ;;  %606 = vmatpush.msrb.mxu2 %v369_v31  ;;  %v325_v12 = vld [vmem:[%s1891_s4 + $0x8] sm:$0xff]  ;;  %v326_v13 = vld [vmem:[%s1891_s4 + $0x10] sm:$0xff]  ;;  %v324_v14 = vld [vmem:[%s1891_s4] sm:$0xff] }
  0x38   : > { %635 = vmatpush.msrb.mxu3 %v370_v32  ;;  %577 = vmatpush.msrb.mxu1 %v368_v33  ;;  %v327_v15 = vld [vmem:[%s1891_s4 + $0x18] sm:$0xff]  ;;  %v1125_v16 = vld [vmem:[%s1891_s4 + $0x5e8] sm:$0xff]  ;;  %v1126_v17 = vld [vmem:[%s1891_s4 + $0x5f0] sm:$0xff] }
  0x39   : > { %660 = vmatpush.msra.mxu0 %v387_v18  ;;  %607 = vmatpush.msrb.mxu2 %v365_v35  ;;  %v1124_v18 = vld [vmem:[%s1891_s4 + $0x5e0] sm:$0xff]  ;;  %v1127_v19 = vld [vmem:[%s1891_s4 + $0x5f8] sm:$0xff]  ;;  %v1121_v20 = vld [vmem:[%s1891_s4 + $0x5c8] sm:$0xff] }
  0x3a   : > { %636 = vmatpush.msrb.mxu3 %v366_v36  ;;  %578 = vmatpush.msrb.mxu1 %v364_v37  ;;  %v1122_v21 = vld [vmem:[%s1891_s4 + $0x5d0] sm:$0xff]  ;;  %v1123_v23 = vld [vmem:[%s1891_s4 + $0x5d8] sm:$0xff]  ;;  %v1117_v25 = vld [vmem:[%s1891_s4 + $0x5a8] sm:$0xff] }
  0x3b   : > { %661 = vmatpush.msra.mxu0 %v383_v22  ;;  %608 = vmatpush.msrb.mxu2 %v361_v39  ;;  %v1120_v22 = vld [vmem:[%s1891_s4 + $0x5c0] sm:$0xff]  ;;  %v1119_v28 = vld [vmem:[%s1891_s4 + $0x5b8] sm:$0xff]  ;;  %v1113_v29 = vld [vmem:[%s1891_s4 + $0x588] sm:$0xff] }
  0x3c   : > { %637 = vmatpush.msrb.mxu3 %v362_v40  ;;  %579 = vmatpush.msrb.mxu1 %v360_v41  ;;  %v1116_v27 = vld [vmem:[%s1891_s4 + $0x5a0] sm:$0xff]  ;;  %v1115_v32 = vld [vmem:[%s1891_s4 + $0x598] sm:$0xff]  ;;  %v1109_v33 = vld [vmem:[%s1891_s4 + $0x568] sm:$0xff] }
  0x3d   : > { %662 = vmatpush.msra.mxu0 %v379_v26  ;;  %609 = vmatpush.msrb.mxu2 %v357_v43  ;;  %v1118_v26 = vld [vmem:[%s1891_s4 + $0x5b0] sm:$0xff]  ;;  %v1112_v31 = vld [vmem:[%s1891_s4 + $0x580] sm:$0xff]  ;;  %v1111_v36 = vld [vmem:[%s1891_s4 + $0x578] sm:$0xff] }
  0x3e   : > { %638 = vmatpush.msrb.mxu3 %v358_v44  ;;  %580 = vmatpush.msrb.mxu1 %v356_v45  ;;  %v1108_v35 = vld [vmem:[%s1891_s4 + $0x560] sm:$0xff]  ;;  %v1106_v39 = vld [vmem:[%s1891_s4 + $0x550] sm:$0xff]  ;;  %v1107_v41 = vld [vmem:[%s1891_s4 + $0x558] sm:$0xff] }
  0x3f   : > { %663 = vmatpush.msra.mxu0 %v375_v30  ;;  %610 = vmatpush.msrb.mxu2 %v353_v47  ;;  %v1114_v30 = vld [vmem:[%s1891_s4 + $0x590] sm:$0xff]  ;;  %v1104_v40 = vld [vmem:[%s1891_s4 + $0x540] sm:$0xff]  ;;  %v1103_v45 = vld [vmem:[%s1891_s4 + $0x538] sm:$0xff] }
  0x40   : > { %639 = vmatpush.msrb.mxu3 %v354_v48  ;;  %581 = vmatpush.msrb.mxu1 %v352_v49  ;;  %v1102_v43 = vld [vmem:[%s1891_s4 + $0x530] sm:$0xff]  ;;  %v1100_v44 = vld [vmem:[%s1891_s4 + $0x520] sm:$0xff]  ;;  %v1099_v49 = vld [vmem:[%s1891_s4 + $0x518] sm:$0xff] }
  0x41   : > { %664 = vmatpush.msra.mxu0 %v371_v34  ;;  %611 = vmatpush.msrb.mxu2 %v349_v51  ;;  %v1110_v34 = vld [vmem:[%s1891_s4 + $0x570] sm:$0xff]  ;;  %v1096_v48 = vld [vmem:[%s1891_s4 + $0x500] sm:$0xff]  ;;  %v1093_v51 = vld [vmem:[%s1891_s4 + $0x4e8] sm:$0xff] }
  0x42   : > { %640 = vmatpush.msrb.mxu3 %v350_v52  ;;  %582 = vmatpush.msrb.mxu1 %v348_v53  ;;  %v1098_v47 = vld [vmem:[%s1891_s4 + $0x510] sm:$0xff]  ;;  %v1092_v53 = vld [vmem:[%s1891_s4 + $0x4e0] sm:$0xff] }
  0x43   : > { %665 = vmatpush.msra.mxu0 %v367_v38  ;;  %612 = vmatpush.msrb.mxu2 %v345_v55  ;;  %v1105_v38 = vld [vmem:[%s1891_s4 + $0x548] sm:$0xff]  ;;  %v1094_v52 = vld [vmem:[%s1891_s4 + $0x4f0] sm:$0xff] }
  0x44   : > { %641 = vmatpush.msrb.mxu3 %v346_v56  ;;  %583 = vmatpush.msrb.mxu1 %v344_v57  ;;  %v1089_v55 = vld [vmem:[%s1891_s4 + $0x4c8] sm:$0xff]  ;;  %v1090_v56 = vld [vmem:[%s1891_s4 + $0x4d0] sm:$0xff]  ;;  %v1088_v57 = vld [vmem:[%s1891_s4 + $0x4c0] sm:$0xff] }
  0x45   : > { %666 = vmatpush.msra.mxu0 %v363_v42  ;;  %613 = vmatpush.msrb.mxu2 %v341_v59  ;;  %v1101_v42 = vld [vmem:[%s1891_s4 + $0x528] sm:$0xff] }
  0x46   : > { %642 = vmatpush.msrb.mxu3 %v342_v60  ;;  %584 = vmatpush.msrb.mxu1 %v340_v61  ;;  %v1085_v59 = vld [vmem:[%s1891_s4 + $0x4a8] sm:$0xff]  ;;  %v1086_v60 = vld [vmem:[%s1891_s4 + $0x4b0] sm:$0xff]  ;;  %v1084_v61 = vld [vmem:[%s1891_s4 + $0x4a0] sm:$0xff] }
  0x47   : > { %667 = vmatpush.msra.mxu0 %v359_v46  ;;  %614 = vmatpush.msrb.mxu2 %v337_v63  ;;  %v1097_v46 = vld [vmem:[%s1891_s4 + $0x508] sm:$0xff] }
  0x48   : > { %643 = vmatpush.msrb.mxu3 %v338_v0  ;;  %585 = vmatpush.msrb.mxu1 %v336_v1  ;;  %v1081_v0 = vld [vmem:[%s1891_s4 + $0x488] sm:$0xff]  ;;  %v1082_v1 = vld [vmem:[%s1891_s4 + $0x490] sm:$0xff] }
  0x49   : > { %668 = vmatpush.msra.mxu0 %v355_v50  ;;  %615 = vmatpush.msrb.mxu2 %v333_v3  ;;  %v1083_v3 = vld [vmem:[%s1891_s4 + $0x498] sm:$0xff] }
  0x4a   : > { %644 = vmatpush.msrb.mxu3 %v334_v4  ;;  %586 = vmatpush.msrb.mxu1 %v332_v5  ;;  %v1077_v4 = vld [vmem:[%s1891_s4 + $0x468] sm:$0xff]  ;;  %v1078_v5 = vld [vmem:[%s1891_s4 + $0x470] sm:$0xff] }
  0x4b   : > { %669 = vmatpush.msra.mxu0 %v351_v54  ;;  %616 = vmatpush.msrb.mxu2 %v329_v7  ;;  %v1095_v54 = vld [vmem:[%s1891_s4 + $0x4f8] sm:$0xff] }
  0x4c   : > { %645 = vmatpush.msrb.mxu3 %v330_v8  ;;  %587 = vmatpush.msrb.mxu1 %v328_v9  ;;  %v1079_v7 = vld [vmem:[%s1891_s4 + $0x478] sm:$0xff]  ;;  %v1073_v8 = vld [vmem:[%s1891_s4 + $0x448] sm:$0xff]  ;;  %v1074_v9 = vld [vmem:[%s1891_s4 + $0x450] sm:$0xff] }
  0x4d   : > { %670 = vmatpush.msra.mxu0 %v347_v58  ;;  %617 = vmatpush.msrb.mxu2 %v325_v12  ;;  %v1091_v58 = vld [vmem:[%s1891_s4 + $0x4d8] sm:$0xff] }
  0x4e   : > { %646 = vmatpush.msrb.mxu3 %v326_v13  ;;  %588 = vmatpush.msrb.mxu1 %v324_v14  ;;  %v1069_v13 = vld [vmem:[%s1891_s4 + $0x428] sm:$0xff]  ;;  %v1070_v14 = vld [vmem:[%s1891_s4 + $0x430] sm:$0xff] }
  0x4f   : > { %671 = vmatpush.msra.mxu0 %v343_v62  ;;  %v1087_v62 = vld [vmem:[%s1891_s4 + $0x4b8] sm:$0xff] }
  0x51   : > { %672 = vmatpush.msra.mxu0 %v339_v2  ;;  %v1080_v2 = vld [vmem:[%s1891_s4 + $0x480] sm:$0xff] }
  0x53   : > { %673 = vmatpush.msra.mxu0 %v335_v6  ;;  %v1076_v6 = vld [vmem:[%s1891_s4 + $0x460] sm:$0xff] }
  0x55   : > { %674 = vmatpush.msra.mxu0 %v331_v10  ;;  %v1072_v10 = vld [vmem:[%s1891_s4 + $0x440] sm:$0xff] }
  0x57   : > { %675 = vmatpush.msra.mxu0 %v327_v15  ;;  %v1068_v15 = vld [vmem:[%s1891_s4 + $0x420] sm:$0xff] }
  0x95   : > { %v304_v11 = vpop.f32.mrf.mxu0 }
  0x96   : > { %316 = vst [vmem:[#allocation2 + $0x1] sm:$0xff] %v304_v11  ;;  %473 = vmatmul.f32.vlgmr.msra.gmra.mxu1 %v304_v11  ;;  %502 = vmatmul.f32.vlgmr.msra.gmra.mxu2 %v304_v11 }
  0x97   : > { %531 = vmatmul.f32.vlgmr.msra.gmra.mxu3 %v304_v11  ;;  %560 = vmatmul.f32.vlgmr.msrb.gmra.mxu0 %v304_v11  ;;  %v1075_v11 = vld [vmem:[%s1891_s4 + $0x458] sm:$0xff] }
  0x98   : > { %787 = vmatpush.msra.mxu2 %v1125_v16  ;;  %816 = vmatpush.msra.mxu3 %v1126_v17  ;;  %v1071_v16 = vld [vmem:[%s1891_s4 + $0x438] sm:$0xff]  ;;  %v1065_v17 = vld [vmem:[%s1891_s4 + $0x408] sm:$0xff] }
  0x99   : > { %758 = vmatpush.msra.mxu1 %v1124_v18  ;;  %845 = vmatpush.msrb.mxu0 %v1127_v19  ;;  %v1066_v18 = vld [vmem:[%s1891_s4 + $0x410] sm:$0xff]  ;;  %v1064_v19 = vld [vmem:[%s1891_s4 + $0x400] sm:$0xff] }
  0x9a   : > { %788 = vmatpush.msra.mxu2 %v1121_v20  ;;  %817 = vmatpush.msra.mxu3 %v1122_v21  ;;  %v1067_v20 = vld [vmem:[%s1891_s4 + $0x418] sm:$0xff] }
  0x9b   : > { %759 = vmatpush.msra.mxu1 %v1120_v22  ;;  %846 = vmatpush.msrb.mxu0 %v1123_v23 }
  0x9c   : > { %789 = vmatpush.msra.mxu2 %v1117_v25  ;;  %818 = vmatpush.msra.mxu3 %v1118_v26 }
  0x9d   : > { %v307_v24 = vpop.f32.mrf.mxu0  ;;  %760 = vmatpush.msra.mxu1 %v1116_v27  ;;  %847 = vmatpush.msrb.mxu0 %v1119_v28  ;;  %v320_v63 = vld [vmem:[#allocation2] sm:$0xff] }
  0x9e   : > { %317 = vst [vmem:[#allocation2 + $0x9] sm:$0xff] %v307_v24  ;;  %476 = vmatmul.f32.gmra.mxu1 %v307_v24  ;;  %505 = vmatmul.f32.gmra.mxu2 %v307_v24 }
  0x9f   : > { %534 = vmatmul.f32.gmra.mxu3 %v307_v24  ;;  %563 = vmatmul.f32.gmra.mxu0 %v307_v24 }
  0xa0   : > { %790 = vmatpush.msra.mxu2 %v1113_v29  ;;  %819 = vmatpush.msra.mxu3 %v1114_v30 }
  0xa1   : > { %761 = vmatpush.msra.mxu1 %v1112_v31  ;;  %848 = vmatpush.msrb.mxu0 %v1115_v32 }
  0xa2   : > { %791 = vmatpush.msra.mxu2 %v1109_v33  ;;  %820 = vmatpush.msra.mxu3 %v1110_v34 }
  0xa3   : > { %762 = vmatpush.msra.mxu1 %v1108_v35  ;;  %849 = vmatpush.msrb.mxu0 %v1111_v36 }
  0xa4   : > { %792 = vmatpush.msra.mxu2 %v1105_v38  ;;  %821 = vmatpush.msra.mxu3 %v1106_v39 }
  0xa5   : > { %v310_v37 = vpop.f32.mrf.mxu0  ;;  %763 = vmatpush.msra.mxu1 %v1104_v40  ;;  %850 = vmatpush.msrb.mxu0 %v1107_v41  ;;  %v321_v12 = vld [vmem:[#allocation2 + $0x8] sm:$0xff] }
  0xa6   : > { %318 = vst [vmem:[#allocation2 + $0x11] sm:$0xff] %v310_v37  ;;  %479 = vmatmul.f32.gmra.mxu1 %v310_v37  ;;  %508 = vmatmul.f32.gmra.mxu2 %v310_v37  ;;  %v689_v23 = vld [vmem:[#allocation2 + $0x2] sm:$0xff] }
  0xa7   : > { %537 = vmatmul.f32.gmra.mxu3 %v310_v37  ;;  %566 = vmatmul.f32.gmra.mxu0 %v310_v37 }
  0xa8   : > { %793 = vmatpush.msra.mxu2 %v1101_v42  ;;  %822 = vmatpush.msra.mxu3 %v1102_v43 }
  0xa9   : > { %764 = vmatpush.msra.mxu1 %v1100_v44  ;;  %851 = vmatpush.msrb.mxu0 %v1103_v45 }
  0xaa   : > { %794 = vmatpush.msra.mxu2 %v1097_v46  ;;  %823 = vmatpush.msra.mxu3 %v1098_v47 }
  0xab   : > { %765 = vmatpush.msra.mxu1 %v1096_v48  ;;  %852 = vmatpush.msrb.mxu0 %v1099_v49 }
  0xac   : > { %795 = vmatpush.msra.mxu2 %v1093_v51  ;;  %824 = vmatpush.msra.mxu3 %v1094_v52 }
  0xad   : > { %v313_v50 = vpop.f32.mrf.mxu0  ;;  %766 = vmatpush.msra.mxu1 %v1092_v53  ;;  %853 = vmatpush.msrb.mxu0 %v1095_v54  ;;  %v322_v21 = vld [vmem:[#allocation2 + $0x10] sm:$0xff] }
  0xae   : > { %319 = vst [vmem:[#allocation2 + $0x19] sm:$0xff] %v313_v50  ;;  %482 = vmatmul.f32.gmra.mxu1 %v313_v50  ;;  %511 = vmatmul.f32.gmra.mxu2 %v313_v50  ;;  %v690_v24 = vld [vmem:[#allocation2 + $0xa] sm:$0xff] }
  0xaf   : > { %540 = vmatmul.f32.gmra.mxu3 %v313_v50  ;;  %569 = vmatmul.f32.gmra.mxu0 %v313_v50 }
  0xb0   : > { %796 = vmatpush.msra.mxu2 %v1089_v55  ;;  %825 = vmatpush.msra.mxu3 %v1090_v56 }
  0xb1   : > { %767 = vmatpush.msra.mxu1 %v1088_v57  ;;  %854 = vmatpush.msrb.mxu0 %v1091_v58  ;;  %v890_v57 = vld [vmem:[%s1892_s5] sm:$0xf] }
  0xb2   : > { %797 = vmatpush.msra.mxu2 %v1085_v59  ;;  %826 = vmatpush.msra.mxu3 %v1086_v60 }
  0xb3   : > { %768 = vmatpush.msra.mxu1 %v1084_v61  ;;  %855 = vmatpush.msrb.mxu0 %v1087_v62  ;;  %v1827_v61 = vperm.slane %v890_v57, 0 }
  0xb4   : > { %798 = vmatpush.msra.mxu2 %v1081_v0  ;;  %827 = vmatpush.msra.mxu3 %v1082_v1  ;;  %v1829_v0 = vperm.slane %v890_v57, 3 }
  0xb5   : > { %769 = vmatpush.msra.mxu1 %v1080_v2  ;;  %856 = vmatpush.msrb.mxu0 %v1083_v3  ;;  %v323_v22 = vld [vmem:[#allocation2 + $0x18] sm:$0xff] }
  0xb6   : > { %589 = vmatmul.f32.vlgmr.msrb.gmra.mxu1 %v320_v63  ;;  %618 = vmatmul.f32.vlgmr.msrb.gmra.mxu2 %v320_v63  ;;  %v691_v25 = vld [vmem:[#allocation2 + $0x12] sm:$0xff]  ;;  %v692_v26 = vld [vmem:[#allocation2 + $0x1a] sm:$0xff] }
  0xb7   : > { %647 = vmatmul.f32.vlgmr.msrb.gmra.mxu3 %v320_v63  ;;  %676 = vmatmul.f32.vlgmr.msra.gmra.mxu0 %v320_v63 }
  0xb8   : > { %799 = vmatpush.msra.mxu2 %v1077_v4  ;;  %828 = vmatpush.msra.mxu3 %v1078_v5 }
  0xb9   : > { %770 = vmatpush.msra.mxu1 %v1076_v6  ;;  %857 = vmatpush.msrb.mxu0 %v1079_v7  ;;  %v1839_v7 = vperm.slane %v890_v57, 1 }
  0xba   : > { %800 = vmatpush.msra.mxu2 %v1073_v8  ;;  %829 = vmatpush.msra.mxu3 %v1074_v9 }
  0xbb   : > { %771 = vmatpush.msra.mxu1 %v1072_v10  ;;  %858 = vmatpush.msrb.mxu0 %v1075_v11  ;;  %v1842_v10 = vperm.slane %v890_v57, 2 }
  0xbc   : > { %801 = vmatpush.msra.mxu2 %v1069_v13  ;;  %830 = vmatpush.msra.mxu3 %v1070_v14 }
  0xbd   : > { %772 = vmatpush.msra.mxu1 %v1068_v15  ;;  %859 = vmatpush.msrb.mxu0 %v1071_v16 }
  0xbe   : > { %592 = vmatmul.f32.gmra.mxu1 %v321_v12  ;;  %621 = vmatmul.f32.gmra.mxu2 %v321_v12 }
  0xbf   : > { %650 = vmatmul.f32.gmra.mxu3 %v321_v12  ;;  %679 = vmatmul.f32.gmra.mxu0 %v321_v12 }
  0xc0   : > { %802 = vmatpush.msra.mxu2 %v1065_v17  ;;  %831 = vmatpush.msra.mxu3 %v1066_v18 }
  0xc1   : > { %773 = vmatpush.msra.mxu1 %v1064_v19  ;;  %860 = vmatpush.msrb.mxu0 %v1067_v20 }
  0xc6   : > { %595 = vmatmul.f32.gmra.mxu1 %v322_v21  ;;  %624 = vmatmul.f32.gmra.mxu2 %v322_v21 }
  0xc7   : > { %653 = vmatmul.f32.gmra.mxu3 %v322_v21  ;;  %682 = vmatmul.f32.gmra.mxu0 %v322_v21 }
  0xce   : > { %598 = vmatmul.f32.gmra.mxu1 %v323_v22  ;;  %627 = vmatmul.f32.gmra.mxu2 %v323_v22 }
  0xcf   : > { %656 = vmatmul.f32.gmra.mxu3 %v323_v22  ;;  %685 = vmatmul.f32.gmra.mxu0 %v323_v22 }
  0xd6   : > { %774 = vmatmul.f32.vlgmr.msra.gmra.mxu1 %v689_v23  ;;  %803 = vmatmul.f32.vlgmr.msra.gmra.mxu2 %v689_v23 }
  0xd7   : > { %832 = vmatmul.f32.vlgmr.msra.gmra.mxu3 %v689_v23  ;;  %861 = vmatmul.f32.vlgmr.msrb.gmra.mxu0 %v689_v23 }
  0xde   : > { %777 = vmatmul.f32.gmra.mxu1 %v690_v24  ;;  %806 = vmatmul.f32.gmra.mxu2 %v690_v24 }
  0xdf   : > { %835 = vmatmul.f32.gmra.mxu3 %v690_v24  ;;  %864 = vmatmul.f32.gmra.mxu0 %v690_v24 }
  0xe6   : > { %780 = vmatmul.f32.gmra.mxu1 %v691_v25  ;;  %809 = vmatmul.f32.gmra.mxu2 %v691_v25 }
  0xe7   : > { %838 = vmatmul.f32.gmra.mxu3 %v691_v25  ;;  %867 = vmatmul.f32.gmra.mxu0 %v691_v25 }
  0xee   : > { %783 = vmatmul.f32.gmra.mxu1 %v692_v26  ;;  %812 = vmatmul.f32.gmra.mxu2 %v692_v26 }
  0xef   : > { %841 = vmatmul.f32.gmra.mxu3 %v692_v26  ;;  %870 = vmatmul.f32.gmra.mxu0 %v692_v26 }
 0x113   : > { %v474_v27 = vpop.f32.mrf.mxu1 }
 0x114   : > { %v561_v28 = vpop.f32.mrf.mxu0 }
 0x119   : > { %v503_v29 = vpop.f32.mrf.mxu2 }
 0x11a   : > { %v532_v30 = vpop.f32.mrf.mxu3 }
 0x11b   : > { %v477_v31 = vpop.f32.mrf.mxu1 }
 0x11c   : > { %v564_v32 = vpop.f32.mrf.mxu0 }
 0x121   : > { %v506_v33 = vpop.f32.mrf.mxu2 }
 0x122   : > { %v535_v34 = vpop.f32.mrf.mxu3 }
 0x123   : > { %v1799_v35 = vpop.f32.mrf.mxu1 }
 0x124   : > { %v1801_v36 = vpop.f32.mrf.mxu0 }
 0x129   : > { %v1803_v37 = vpop.f32.mrf.mxu2 }
 0x12a   : > { %v1805_v38 = vpop.f32.mrf.mxu3 }
 0x12b   : > { %v1807_v39 = vpop.f32.mrf.mxu1 }
 0x12c   : > { %v1809_v40 = vpop.f32.mrf.mxu0 }
 0x131   : > { %v1811_v41 = vpop.f32.mrf.mxu2 }
 0x132   : > { %v1813_v42 = vpop.f32.mrf.mxu3 }
 0x133   : > { %v590_v43 = vpop.f32.mrf.mxu1 }
 0x134   : > { %v677_v44 = vpop.f32.mrf.mxu0  ;;  %v591_v59 = vadd.f32 %v590_v43, %v474_v27 }
 0x135   : > { %v678_v62 = vadd.f32 %v677_v44, %v561_v28 }
 0x139   : > { %v619_v45 = vpop.f32.mrf.mxu2 }
 0x13a   : > { %v648_v46 = vpop.f32.mrf.mxu3  ;;  %v620_v6 = vadd.f32 %v619_v45, %v503_v29 }
 0x13b   : > { %v593_v47 = vpop.f32.mrf.mxu1  ;;  %v649_v8 = vadd.f32 %v648_v46, %v532_v30 }
 0x13c   : > { %v680_v48 = vpop.f32.mrf.mxu0  ;;  %v594_v11 = vadd.f32 %v593_v47, %v477_v31 }
 0x13d   : > { %v681_v14 = vadd.f32 %v680_v48, %v564_v32 }
 0x141   : > { %v622_v49 = vpop.f32.mrf.mxu2 }
 0x142   : > { %v651_v50 = vpop.f32.mrf.mxu3  ;;  %v623_v24 = vadd.f32 %v622_v49, %v506_v33 }
 0x143   : > { %v596_v51 = vpop.f32.mrf.mxu1  ;;  %v652_v25 = vadd.f32 %v651_v50, %v535_v34 }
 0x144   : > { %v683_v52 = vpop.f32.mrf.mxu0  ;;  %v597_v27 = vadd.f32 %v596_v51, %v1799_v35 }
 0x145   : > { %v684_v30 = vadd.f32 %v683_v52, %v1801_v36 }
 0x149   : > { %v625_v53 = vpop.f32.mrf.mxu2 }
 0x14a   : > { %v654_v54 = vpop.f32.mrf.mxu3  ;;  %v626_v47 = vadd.f32 %v625_v53, %v1803_v37 }
 0x14b   : > { %v1815_v55 = vpop.f32.mrf.mxu1  ;;  %v655_v36 = vadd.f32 %v654_v54, %v1805_v38 }
 0x14c   : > { %v1817_v56 = vpop.f32.mrf.mxu0  ;;  %v600_v49 = vadd.f32 %v1815_v55, %v1807_v39 }
 0x14d   : > { %v687_v52 = vadd.f32 %v1817_v56, %v1809_v40 }
 0x151   : > { %v1822_v58 = vpop.f32.mrf.mxu2 }
 0x152   : > { %v1825_v60 = vpop.f32.mrf.mxu3  ;;  %v629_v40 = vadd.f32 %v1822_v58, %v1811_v41 }
 0x153   : > { %v775_v63 = vpop.f32.mrf.mxu1  ;;  %v658_v56 = vadd.f32 %v1825_v60, %v1813_v42 }
 0x154   : > { %v874_v1 = vadd.f32 %v775_v63, %v591_v59  ;;  %v862_v2 = vpop.f32.mrf.mxu0 }
 0x155   : > { %v877_v3 = vadd.f32 %v862_v2, %v678_v62 }
 0x156   : > { %v900_v4 = vadd.f32 %v1827_v61, %v874_v1 }
 0x157   : > { %v903_v5 = vadd.f32 %v1829_v0, %v877_v3 }
 0x158   : > { %916 = vst [vmem:[%s1834_s8] sm:$0xff] %v900_v4 }
 0x159   : > { %919 = vst [vmem:[%s1834_s8 + $0x18] sm:$0xff] %v903_v5  ;;  %v804_v9 = vpop.f32.mrf.mxu2 }
 0x15a   : > { %v875_v12 = vadd.f32 %v804_v9, %v620_v6  ;;  %v833_v13 = vpop.f32.mrf.mxu3 }
 0x15b   : > { %v876_v15 = vadd.f32 %v833_v13, %v649_v8  ;;  %v778_v16 = vpop.f32.mrf.mxu1 }
 0x15c   : > { %v901_v17 = vadd.f32 %v1839_v7, %v875_v12  ;;  %v878_v18 = vadd.f32 %v778_v16, %v594_v11  ;;  %v865_v19 = vpop.f32.mrf.mxu0 }
 0x15d   : > { %v902_v20 = vadd.f32 %v1842_v10, %v876_v15  ;;  %v881_v21 = vadd.f32 %v865_v19, %v681_v14 }
 0x15e   : > { %917 = vst [vmem:[%s1834_s8 + $0x8] sm:$0xff] %v901_v17  ;;  %v904_v22 = vadd.f32 %v1827_v61, %v878_v18 }
 0x15f   : > { %918 = vst [vmem:[%s1834_s8 + $0x10] sm:$0xff] %v902_v20  ;;  %v907_v23 = vadd.f32 %v1829_v0, %v881_v21 }
 0x160   : > { %920 = vst [vmem:[%s1834_s8 + $0x20] sm:$0xff] %v904_v22 }
 0x161   : > { %923 = vst [vmem:[%s1834_s8 + $0x38] sm:$0xff] %v907_v23  ;;  %v807_v26 = vpop.f32.mrf.mxu2 }
 0x162   : > { %v879_v28 = vadd.f32 %v807_v26, %v623_v24  ;;  %v836_v29 = vpop.f32.mrf.mxu3 }
 0x163   : > { %v880_v31 = vadd.f32 %v836_v29, %v652_v25  ;;  %v781_v32 = vpop.f32.mrf.mxu1 }
 0x164   : > { %v905_v43 = vadd.f32 %v1839_v7, %v879_v28  ;;  %v882_v44 = vadd.f32 %v781_v32, %v597_v27  ;;  %v868_v33 = vpop.f32.mrf.mxu0 }
 0x165   : > { %v906_v45 = vadd.f32 %v1842_v10, %v880_v31  ;;  %v885_v34 = vadd.f32 %v868_v33, %v684_v30 }
 0x166   : > { %921 = vst [vmem:[%s1834_s8 + $0x28] sm:$0xff] %v905_v43  ;;  %v908_v46 = vadd.f32 %v1827_v61, %v882_v44 }
 0x167   : > { %922 = vst [vmem:[%s1834_s8 + $0x30] sm:$0xff] %v906_v45  ;;  %v911_v35 = vadd.f32 %v1829_v0, %v885_v34 }
 0x168   : > { %924 = vst [vmem:[%s1834_s8 + $0x40] sm:$0xff] %v908_v46 }
 0x169   : > { %927 = vst [vmem:[%s1834_s8 + $0x58] sm:$0xff] %v911_v35  ;;  %v810_v48 = vpop.f32.mrf.mxu2 }
 0x16a   : > { %v883_v50 = vadd.f32 %v810_v48, %v626_v47  ;;  %v839_v51 = vpop.f32.mrf.mxu3 }
 0x16b   : > { %v884_v57 = vadd.f32 %v839_v51, %v655_v36  ;;  %v784_v59 = vpop.f32.mrf.mxu1 }
 0x16c   : > { %v909_v37 = vadd.f32 %v1839_v7, %v883_v50  ;;  %v886_v53 = vadd.f32 %v784_v59, %v600_v49  ;;  %v871_v62 = vpop.f32.mrf.mxu0 }
 0x16d   : > { %v910_v38 = vadd.f32 %v1842_v10, %v884_v57  ;;  %v889_v54 = vadd.f32 %v871_v62, %v687_v52 }
 0x16e   : > { %925 = vst [vmem:[%s1834_s8 + $0x48] sm:$0xff] %v909_v37  ;;  %v912_v39 = vadd.f32 %v1827_v61, %v886_v53 }
 0x16f   : > { %926 = vst [vmem:[%s1834_s8 + $0x50] sm:$0xff] %v910_v38  ;;  %v915_v55 = vadd.f32 %v1829_v0, %v889_v54 }
 0x170   : > { %928 = vst [vmem:[%s1834_s8 + $0x60] sm:$0xff] %v912_v39 }
 0x171   : > { %931 = vst [vmem:[%s1834_s8 + $0x78] sm:$0xff] %v915_v55  ;;  %v813_v63 = vpop.f32.mrf.mxu2 }
 0x172   : > { %v887_v1 = vadd.f32 %v813_v63, %v629_v40  ;;  %v842_v2 = vpop.f32.mrf.mxu3 }
 0x173   : > { %v888_v3 = vadd.f32 %v842_v2, %v658_v56 }
 0x174   : > { %v913_v4 = vadd.f32 %v1839_v7, %v887_v1 }
 0x175   : > { %v914_v5 = vadd.f32 %v1842_v10, %v888_v3 }
 0x176   : > { %929 = vst [vmem:[%s1834_s8 + $0x68] sm:$0xff] %v913_v4 }
 0x177   : > { %930 = vst [vmem:[%s1834_s8 + $0x70] sm:$0xff] %v914_v5 }
 0x178 PF: > { %s16_s21 = sadd.s32 1, %s1149_s21  }
 0x179   : > { %p13_p4 = scmp.ge.s32.totalorder %s16_s21, 4  }
 0x17b   :  { %15 = sbr.rel (!%p13_p4) target bundleno = 1 (0x1), region = 76 }

</bundles_post_ra>
